<compile_context>
chip_gen: v6e
topology: v6e:2x2x1
jax: 0.10.0
libtpu: 0.0.40
codegen_flags: <defaults>
</compile_context>

<pallas_src>
import jax
import jax.numpy as jnp
from jax import lax
from jax.experimental import pallas as pl
from jax.experimental.pallas import tpu as pltpu


def _make_conv_kernel(KH: int, KW: int, Wp: int, Q_pad: int, Cin_pad: int):
    """Per-sample conv kernel: one grid step == one batch sample."""

    def kernel(x_ref, w_ref, b_ref, o_ref, col_ref):
        # x_ref:   (Cin_pad, L)              bf16 zero-padded input, rows flattened
        # w_ref:   (Cout_pad, KH*KW*Cin_pad) bf16 resident weights, lane-dense K
        # b_ref:   (Cout_pad, 1)             f32
        # o_ref:   (Cout_pad, Q_pad)         f32, Q_pad multiple of 128
        # col_ref: (KH*KW*Cin_pad, Q_pad)    bf16 im2col scratch (VMEM)
        for kh in range(KH):
            for kw in range(KW):
                t = kh * KW + kw
                off = kh * Wp + kw                       # static flat offset
                col_ref[t * Cin_pad:(t + 1) * Cin_pad, :] = x_ref[:, off:off + Q_pad]
        # Single MXU pass: (Cout_pad, K) @ (K, Q_pad), K = KH*KW*Cin_pad.
        acc = jnp.dot(w_ref[...], col_ref[...], preferred_element_type=jnp.float32)
        o_ref[...] = (acc + b_ref[...]).astype(o_ref.dtype)

    return kernel


def conv_block_forward(x, weight, bias, *, stride=(1, 1), padding=(5, 5)):
    """Pallas TPU forward for ConvBlock: y = Conv2d(x) + bias, NCHW in / NCHW out."""
    N, Cin, H, W = x.shape
    Cout, Cin_w, KH, KW = weight.shape
    assert Cin_w == Cin
    assert tuple(stride) == (1, 1), "kernel implements the module's stride=(1,1) path"
    ph, pw = padding

    Hp, Wp = H + 2 * ph, W + 2 * pw
    Ho, Wo = Hp - KH + 1, Wp - KW + 1
    Q = Ho * Wp                               # over-wide rows (Wp wide, Wo valid)
    Q_pad = pl.cdiv(Q, 128) * 128             # lane-dense output columns
    Cout_pad = pl.cdiv(Cout, 8) * 8           # sublane dim: 8-alignment is enough
    Cin_pad = pl.cdiv(Cin, 8) * 8             # full-tile, aligned im2col tap writes
    TAPS = KH * KW
    max_off = (KH - 1) * Wp + (KW - 1)
    L = pl.cdiv(max_off + Q_pad, 128) * 128   # flat input length the kernel slices from

    # ---- glue: zero-pad (spatial + channel), flatten rows, cast to bf16 ----
    # TODO(synk): for large images, pass x with memory_space=pl.ANY and do the
    # zero-fill/row copies in-kernel to avoid this extra HBM copy.
    x_pad = jnp.pad(x, ((0, 0), (0, Cin_pad - Cin), (ph, ph), (pw, pw)))
    x_flat = x_pad.reshape(N, Cin_pad, Hp * Wp)
    x_flat = jnp.pad(x_flat, ((0, 0), (0, 0), (0, L - Hp * Wp))).astype(jnp.bfloat16)

    # ---- glue: one-time parameter re-layout (conceptually done at model init) ----
    # OIHW -> (Cout_pad, KH*KW*Cin_pad): lane-dense contraction dim, bf16.
    w_r = jnp.transpose(weight, (0, 2, 3, 1))                       # (Cout, KH, KW, Cin)
    w_r = jnp.pad(w_r, ((0, Cout_pad - Cout), (0, 0), (0, 0), (0, Cin_pad - Cin)))
    w_p = w_r.reshape(Cout_pad, TAPS * Cin_pad).astype(jnp.bfloat16)
    b_p = jnp.pad(bias, (0, Cout_pad - Cout)).astype(jnp.float32).reshape(Cout_pad, 1)

    out = pl.pallas_call(
        _make_conv_kernel(KH, KW, Wp, Q_pad, Cin_pad),
        out_shape=jax.ShapeDtypeStruct((N, Cout_pad, Q_pad), jnp.float32),
        grid=(N,),
        in_specs=[
            pl.BlockSpec((None, Cin_pad, L), lambda n: (n, 0, 0)),
            pl.BlockSpec((Cout_pad, TAPS * Cin_pad), lambda n: (0, 0)),
            pl.BlockSpec((Cout_pad, 1), lambda n: (0, 0)),
        ],
        out_specs=pl.BlockSpec((None, Cout_pad, Q_pad), lambda n: (n, 0, 0)),
        scratch_shapes=[pltpu.VMEM((TAPS * Cin_pad, Q_pad), jnp.bfloat16)],
        compiler_params=pltpu.CompilerParams(
            dimension_semantics=("parallel",)),
    )(x_flat, w_p, b_p)

    # ---- glue: strip channel/column padding, reshape to NCHW (no transpose) ----
    out = out[:, :Cout, :Q].reshape(N, Cout, Ho, Wp)[:, :, :, :Wo]
    return out


if __name__ == "__main__":
    # Small shapes consistent with the module: NCHW input, 6x6 kernel, pad 5.
    N, Cin, Cout = 2, 4, 32
    H = W = 16
    KH = KW = 6

    key = jax.random.PRNGKey(0)
    kx, kw_, kb = jax.random.split(key, 3)
    x = jax.random.normal(kx, (N, Cin, H, W), dtype=jnp.float32)
    weight = jax.random.normal(kw_, (Cout, Cin, KH, KW), dtype=jnp.float32) * 0.05
    bias = jax.random.normal(kb, (Cout,), dtype=jnp.float32) * 0.1

    out = conv_block_forward(x, weight, bias)
    out = jax.block_until_ready(out)

    # Plain-XLA reference (same conv semantics as nn.Conv2d).
    ref = lax.conv_general_dilated(
        x, weight, window_strides=(1, 1), padding=((5, 5), (5, 5)),
        dimension_numbers=("NCHW", "OIHW", "NCHW"),
        precision=lax.Precision.HIGHEST,
    ) + bias.reshape(1, Cout, 1, 1)

    assert out.shape == ref.shape == (N, Cout, H + 5, W + 5), (out.shape, ref.shape)
    max_err = float(jnp.max(jnp.abs(out - ref)))
    # bf16 operands / f32 accumulation -> slightly looser tolerance than pure f32.
    assert jnp.allclose(out, ref, atol=5e-2, rtol=5e-2), max_err

    print("KERNEL_OK")
</pallas_src>

<mosaic_0001>
module attributes {stable_mosaic.version = 11 : i64} {
  func.func @kernel(%arg0: i32, %arg1: memref<1x8x896xbf16, #tpu.memory_space<vmem>>, %arg2: memref<32x288xbf16, #tpu.memory_space<vmem>>, %arg3: memref<32x1xf32, #tpu.memory_space<vmem>>, %arg4: memref<1x32x640xf32, #tpu.memory_space<vmem>>, %arg5: memref<288x640xbf16, #tpu.memory_space<vmem>>) attributes {dimension_semantics = [#tpu.dimension_semantics<parallel>], iteration_bounds = array<i64: 2>, scalar_prefetch = 0 : i64, scratch_operands = 1 : i64, tpu.core_type = #tpu.core_type<tc>, window_params = [{transform_indices = @transform_0, window_bounds = array<i64: 1, 8, 896>}, {pipeline_mode = #tpu.pipeline_mode<synchronous>, transform_indices = @transform_1, window_bounds = array<i64: 32, 288>}, {pipeline_mode = #tpu.pipeline_mode<synchronous>, transform_indices = @transform_2, window_bounds = array<i64: 32, 1>}, {transform_indices = @transform_3, window_bounds = array<i64: 1, 32, 640>}]} {
    %c0 = arith.constant 0 : index
    %c0_0 = arith.constant 0 : index
    %c0_1 = arith.constant 0 : index
    %0 = vector.load %arg1[%c0, %c0_0, %c0_1] : memref<1x8x896xbf16, #tpu.memory_space<vmem>>, vector<1x8x640xbf16>
    %1 = vector.shape_cast %0 : vector<1x8x640xbf16> to vector<8x640xbf16>
    %c0_2 = arith.constant 0 : index
    %c0_3 = arith.constant 0 : index
    %2 = vector.load %arg5[%c0_2, %c0_3] : memref<288x640xbf16, #tpu.memory_space<vmem>>, vector<8x640xbf16>
    tpu.vector_store %arg5[%c0_2, %c0_3], %1 {strides = array<i32>} : memref<288x640xbf16, #tpu.memory_space<vmem>>, vector<8x640xbf16>,
    %c0_4 = arith.constant 0 : index
    %c0_5 = arith.constant 0 : index
    %c1 = arith.constant 1 : index
    %3 = vector.load %arg1[%c0_4, %c0_5, %c1] : memref<1x8x896xbf16, #tpu.memory_space<vmem>>, vector<1x8x640xbf16>
    %4 = vector.shape_cast %3 : vector<1x8x640xbf16> to vector<8x640xbf16>
    %c8 = arith.constant 8 : index
    %c0_6 = arith.constant 0 : index
    %5 = vector.load %arg5[%c8, %c0_6] : memref<288x640xbf16, #tpu.memory_space<vmem>>, vector<8x640xbf16>
    tpu.vector_store %arg5[%c8, %c0_6], %4 {strides = array<i32>} : memref<288x640xbf16, #tpu.memory_space<vmem>>, vector<8x640xbf16>,
    %c0_7 = arith.constant 0 : index
    %c0_8 = arith.constant 0 : index
    %c2 = arith.constant 2 : index
    %6 = vector.load %arg1[%c0_7, %c0_8, %c2] : memref<1x8x896xbf16, #tpu.memory_space<vmem>>, vector<1x8x640xbf16>
    %7 = vector.shape_cast %6 : vector<1x8x640xbf16> to vector<8x640xbf16>
    %c16 = arith.constant 16 : index
    %c0_9 = arith.constant 0 : index
    %8 = vector.load %arg5[%c16, %c0_9] : memref<288x640xbf16, #tpu.memory_space<vmem>>, vector<8x640xbf16>
    tpu.vector_store %arg5[%c16, %c0_9], %7 {strides = array<i32>} : memref<288x640xbf16, #tpu.memory_space<vmem>>, vector<8x640xbf16>,
    %c0_10 = arith.constant 0 : index
    %c0_11 = arith.constant 0 : index
    %c3 = arith.constant 3 : index
    %9 = vector.load %arg1[%c0_10, %c0_11, %c3] : memref<1x8x896xbf16, #tpu.memory_space<vmem>>, vector<1x8x640xbf16>
    %10 = vector.shape_cast %9 : vector<1x8x640xbf16> to vector<8x640xbf16>
    %c24 = arith.constant 24 : index
    %c0_12 = arith.constant 0 : index
    %11 = vector.load %arg5[%c24, %c0_12] : memref<288x640xbf16, #tpu.memory_space<vmem>>, vector<8x640xbf16>
    tpu.vector_store %arg5[%c24, %c0_12], %10 {strides = array<i32>} : memref<288x640xbf16, #tpu.memory_space<vmem>>, vector<8x640xbf16>,
    %c0_13 = arith.constant 0 : index
    %c0_14 = arith.constant 0 : index
    %c4 = arith.constant 4 : index
    %12 = vector.load %arg1[%c0_13, %c0_14, %c4] : memref<1x8x896xbf16, #tpu.memory_space<vmem>>, vector<1x8x640xbf16>
    %13 = vector.shape_cast %12 : vector<1x8x640xbf16> to vector<8x640xbf16>
    %c32 = arith.constant 32 : index
    %c0_15 = arith.constant 0 : index
    %14 = vector.load %arg5[%c32, %c0_15] : memref<288x640xbf16, #tpu.memory_space<vmem>>, vector<8x640xbf16>
    tpu.vector_store %arg5[%c32, %c0_15], %13 {strides = array<i32>} : memref<288x640xbf16, #tpu.memory_space<vmem>>, vector<8x640xbf16>,
    %c0_16 = arith.constant 0 : index
    %c0_17 = arith.constant 0 : index
    %c5 = arith.constant 5 : index
    %15 = vector.load %arg1[%c0_16, %c0_17, %c5] : memref<1x8x896xbf16, #tpu.memory_space<vmem>>, vector<1x8x640xbf16>
    %16 = vector.shape_cast %15 : vector<1x8x640xbf16> to vector<8x640xbf16>
    %c40 = arith.constant 40 : index
    %c0_18 = arith.constant 0 : index
    %17 = vector.load %arg5[%c40, %c0_18] : memref<288x640xbf16, #tpu.memory_space<vmem>>, vector<8x640xbf16>
    tpu.vector_store %arg5[%c40, %c0_18], %16 {strides = array<i32>} : memref<288x640xbf16, #tpu.memory_space<vmem>>, vector<8x640xbf16>,
    %c0_19 = arith.constant 0 : index
    %c0_20 = arith.constant 0 : index
    %c26 = arith.constant 26 : index
    %18 = vector.load %arg1[%c0_19, %c0_20, %c26] : memref<1x8x896xbf16, #tpu.memory_space<vmem>>, vector<1x8x640xbf16>
    %19 = vector.shape_cast %18 : vector<1x8x640xbf16> to vector<8x640xbf16>
    %c48 = arith.constant 48 : index
    %c0_21 = arith.constant 0 : index
    %20 = vector.load %arg5[%c48, %c0_21] : memref<288x640xbf16, #tpu.memory_space<vmem>>, vector<8x640xbf16>
    tpu.vector_store %arg5[%c48, %c0_21], %19 {strides = array<i32>} : memref<288x640xbf16, #tpu.memory_space<vmem>>, vector<8x640xbf16>,
    %c0_22 = arith.constant 0 : index
    %c0_23 = arith.constant 0 : index
    %c27 = arith.constant 27 : index
    %21 = vector.load %arg1[%c0_22, %c0_23, %c27] : memref<1x8x896xbf16, #tpu.memory_space<vmem>>, vector<1x8x640xbf16>
    %22 = vector.shape_cast %21 : vector<1x8x640xbf16> to vector<8x640xbf16>
    %c56 = arith.constant 56 : index
    %c0_24 = arith.constant 0 : index
    %23 = vector.load %arg5[%c56, %c0_24] : memref<288x640xbf16, #tpu.memory_space<vmem>>, vector<8x640xbf16>
    tpu.vector_store %arg5[%c56, %c0_24], %22 {strides = array<i32>} : memref<288x640xbf16, #tpu.memory_space<vmem>>, vector<8x640xbf16>,
    %c0_25 = arith.constant 0 : index
    %c0_26 = arith.constant 0 : index
    %c28 = arith.constant 28 : index
    %24 = vector.load %arg1[%c0_25, %c0_26, %c28] : memref<1x8x896xbf16, #tpu.memory_space<vmem>>, vector<1x8x640xbf16>
    %25 = vector.shape_cast %24 : vector<1x8x640xbf16> to vector<8x640xbf16>
    %c64 = arith.constant 64 : index
    %c0_27 = arith.constant 0 : index
    %26 = vector.load %arg5[%c64, %c0_27] : memref<288x640xbf16, #tpu.memory_space<vmem>>, vector<8x640xbf16>
    tpu.vector_store %arg5[%c64, %c0_27], %25 {strides = array<i32>} : memref<288x640xbf16, #tpu.memory_space<vmem>>, vector<8x640xbf16>,
    %c0_28 = arith.constant 0 : index
    %c0_29 = arith.constant 0 : index
    %c29 = arith.constant 29 : index
    %27 = vector.load %arg1[%c0_28, %c0_29, %c29] : memref<1x8x896xbf16, #tpu.memory_space<vmem>>, vector<1x8x640xbf16>
    %28 = vector.shape_cast %27 : vector<1x8x640xbf16> to vector<8x640xbf16>
    %c72 = arith.constant 72 : index
    %c0_30 = arith.constant 0 : index
    %29 = vector.load %arg5[%c72, %c0_30] : memref<288x640xbf16, #tpu.memory_space<vmem>>, vector<8x640xbf16>
    tpu.vector_store %arg5[%c72, %c0_30], %28 {strides = array<i32>} : memref<288x640xbf16, #tpu.memory_space<vmem>>, vector<8x640xbf16>,
    %c0_31 = arith.constant 0 : index
    %c0_32 = arith.constant 0 : index
    %c30 = arith.constant 30 : index
    %30 = vector.load %arg1[%c0_31, %c0_32, %c30] : memref<1x8x896xbf16, #tpu.memory_space<vmem>>, vector<1x8x640xbf16>
    %31 = vector.shape_cast %30 : vector<1x8x640xbf16> to vector<8x640xbf16>
    %c80 = arith.constant 80 : index
    %c0_33 = arith.constant 0 : index
    %32 = vector.load %arg5[%c80, %c0_33] : memref<288x640xbf16, #tpu.memory_space<vmem>>, vector<8x640xbf16>
    tpu.vector_store %arg5[%c80, %c0_33], %31 {strides = array<i32>} : memref<288x640xbf16, #tpu.memory_space<vmem>>, vector<8x640xbf16>,
    %c0_34 = arith.constant 0 : index
    %c0_35 = arith.constant 0 : index
    %c31 = arith.constant 31 : index
    %33 = vector.load %arg1[%c0_34, %c0_35, %c31] : memref<1x8x896xbf16, #tpu.memory_space<vmem>>, vector<1x8x640xbf16>
    %34 = vector.shape_cast %33 : vector<1x8x640xbf16> to vector<8x640xbf16>
    %c88 = arith.constant 88 : index
    %c0_36 = arith.constant 0 : index
    %35 = vector.load %arg5[%c88, %c0_36] : memref<288x640xbf16, #tpu.memory_space<vmem>>, vector<8x640xbf16>
    tpu.vector_store %arg5[%c88, %c0_36], %34 {strides = array<i32>} : memref<288x640xbf16, #tpu.memory_space<vmem>>, vector<8x640xbf16>,
    %c0_37 = arith.constant 0 : index
    %c0_38 = arith.constant 0 : index
    %c52 = arith.constant 52 : index
    %36 = vector.load %arg1[%c0_37, %c0_38, %c52] : memref<1x8x896xbf16, #tpu.memory_space<vmem>>, vector<1x8x640xbf16>
    %37 = vector.shape_cast %36 : vector<1x8x640xbf16> to vector<8x640xbf16>
    %c96 = arith.constant 96 : index
    %c0_39 = arith.constant 0 : index
    %38 = vector.load %arg5[%c96, %c0_39] : memref<288x640xbf16, #tpu.memory_space<vmem>>, vector<8x640xbf16>
    tpu.vector_store %arg5[%c96, %c0_39], %37 {strides = array<i32>} : memref<288x640xbf16, #tpu.memory_space<vmem>>, vector<8x640xbf16>,
    %c0_40 = arith.constant 0 : index
    %c0_41 = arith.constant 0 : index
    %c53 = arith.constant 53 : index
    %39 = vector.load %arg1[%c0_40, %c0_41, %c53] : memref<1x8x896xbf16, #tpu.memory_space<vmem>>, vector<1x8x640xbf16>
    %40 = vector.shape_cast %39 : vector<1x8x640xbf16> to vector<8x640xbf16>
    %c104 = arith.constant 104 : index
    %c0_42 = arith.constant 0 : index
    %41 = vector.load %arg5[%c104, %c0_42] : memref<288x640xbf16, #tpu.memory_space<vmem>>, vector<8x640xbf16>
    tpu.vector_store %arg5[%c104, %c0_42], %40 {strides = array<i32>} : memref<288x640xbf16, #tpu.memory_space<vmem>>, vector<8x640xbf16>,
    %c0_43 = arith.constant 0 : index
    %c0_44 = arith.constant 0 : index
    %c54 = arith.constant 54 : index
    %42 = vector.load %arg1[%c0_43, %c0_44, %c54] : memref<1x8x896xbf16, #tpu.memory_space<vmem>>, vector<1x8x640xbf16>
    %43 = vector.shape_cast %42 : vector<1x8x640xbf16> to vector<8x640xbf16>
    %c112 = arith.constant 112 : index
    %c0_45 = arith.constant 0 : index
    %44 = vector.load %arg5[%c112, %c0_45] : memref<288x640xbf16, #tpu.memory_space<vmem>>, vector<8x640xbf16>
    tpu.vector_store %arg5[%c112, %c0_45], %43 {strides = array<i32>} : memref<288x640xbf16, #tpu.memory_space<vmem>>, vector<8x640xbf16>,
    %c0_46 = arith.constant 0 : index
    %c0_47 = arith.constant 0 : index
    %c55 = arith.constant 55 : index
    %45 = vector.load %arg1[%c0_46, %c0_47, %c55] : memref<1x8x896xbf16, #tpu.memory_space<vmem>>, vector<1x8x640xbf16>
    %46 = vector.shape_cast %45 : vector<1x8x640xbf16> to vector<8x640xbf16>
    %c120 = arith.constant 120 : index
    %c0_48 = arith.constant 0 : index
    %47 = vector.load %arg5[%c120, %c0_48] : memref<288x640xbf16, #tpu.memory_space<vmem>>, vector<8x640xbf16>
    tpu.vector_store %arg5[%c120, %c0_48], %46 {strides = array<i32>} : memref<288x640xbf16, #tpu.memory_space<vmem>>, vector<8x640xbf16>,
    %c0_49 = arith.constant 0 : index
    %c0_50 = arith.constant 0 : index
    %c56_51 = arith.constant 56 : index
    %48 = vector.load %arg1[%c0_49, %c0_50, %c56_51] : memref<1x8x896xbf16, #tpu.memory_space<vmem>>, vector<1x8x640xbf16>
    %49 = vector.shape_cast %48 : vector<1x8x640xbf16> to vector<8x640xbf16>
    %c128 = arith.constant 128 : index
    %c0_52 = arith.constant 0 : index
    %50 = vector.load %arg5[%c128, %c0_52] : memref<288x640xbf16, #tpu.memory_space<vmem>>, vector<8x640xbf16>
    tpu.vector_store %arg5[%c128, %c0_52], %49 {strides = array<i32>} : memref<288x640xbf16, #tpu.memory_space<vmem>>, vector<8x640xbf16>,
    %c0_53 = arith.constant 0 : index
    %c0_54 = arith.constant 0 : index
    %c57 = arith.constant 57 : index
    %51 = vector.load %arg1[%c0_53, %c0_54, %c57] : memref<1x8x896xbf16, #tpu.memory_space<vmem>>, vector<1x8x640xbf16>
    %52 = vector.shape_cast %51 : vector<1x8x640xbf16> to vector<8x640xbf16>
    %c136 = arith.constant 136 : index
    %c0_55 = arith.constant 0 : index
    %53 = vector.load %arg5[%c136, %c0_55] : memref<288x640xbf16, #tpu.memory_space<vmem>>, vector<8x640xbf16>
    tpu.vector_store %arg5[%c136, %c0_55], %52 {strides = array<i32>} : memref<288x640xbf16, #tpu.memory_space<vmem>>, vector<8x640xbf16>,
    %c0_56 = arith.constant 0 : index
    %c0_57 = arith.constant 0 : index
    %c78 = arith.constant 78 : index
    %54 = vector.load %arg1[%c0_56, %c0_57, %c78] : memref<1x8x896xbf16, #tpu.memory_space<vmem>>, vector<1x8x640xbf16>
    %55 = vector.shape_cast %54 : vector<1x8x640xbf16> to vector<8x640xbf16>
    %c144 = arith.constant 144 : index
    %c0_58 = arith.constant 0 : index
    %56 = vector.load %arg5[%c144, %c0_58] : memref<288x640xbf16, #tpu.memory_space<vmem>>, vector<8x640xbf16>
    tpu.vector_store %arg5[%c144, %c0_58], %55 {strides = array<i32>} : memref<288x640xbf16, #tpu.memory_space<vmem>>, vector<8x640xbf16>,
    %c0_59 = arith.constant 0 : index
    %c0_60 = arith.constant 0 : index
    %c79 = arith.constant 79 : index
    %57 = vector.load %arg1[%c0_59, %c0_60, %c79] : memref<1x8x896xbf16, #tpu.memory_space<vmem>>, vector<1x8x640xbf16>
    %58 = vector.shape_cast %57 : vector<1x8x640xbf16> to vector<8x640xbf16>
    %c152 = arith.constant 152 : index
    %c0_61 = arith.constant 0 : index
    %59 = vector.load %arg5[%c152, %c0_61] : memref<288x640xbf16, #tpu.memory_space<vmem>>, vector<8x640xbf16>
    tpu.vector_store %arg5[%c152, %c0_61], %58 {strides = array<i32>} : memref<288x640xbf16, #tpu.memory_space<vmem>>, vector<8x640xbf16>,
    %c0_62 = arith.constant 0 : index
    %c0_63 = arith.constant 0 : index
    %c80_64 = arith.constant 80 : index
    %60 = vector.load %arg1[%c0_62, %c0_63, %c80_64] : memref<1x8x896xbf16, #tpu.memory_space<vmem>>, vector<1x8x640xbf16>
    %61 = vector.shape_cast %60 : vector<1x8x640xbf16> to vector<8x640xbf16>
    %c160 = arith.constant 160 : index
    %c0_65 = arith.constant 0 : index
    %62 = vector.load %arg5[%c160, %c0_65] : memref<288x640xbf16, #tpu.memory_space<vmem>>, vector<8x640xbf16>
    tpu.vector_store %arg5[%c160, %c0_65], %61 {strides = array<i32>} : memref<288x640xbf16, #tpu.memory_space<vmem>>, vector<8x640xbf16>,
    %c0_66 = arith.constant 0 : index
    %c0_67 = arith.constant 0 : index
    %c81 = arith.constant 81 : index
    %63 = vector.load %arg1[%c0_66, %c0_67, %c81] : memref<1x8x896xbf16, #tpu.memory_space<vmem>>, vector<1x8x640xbf16>
    %64 = vector.shape_cast %63 : vector<1x8x640xbf16> to vector<8x640xbf16>
    %c168 = arith.constant 168 : index
    %c0_68 = arith.constant 0 : index
    %65 = vector.load %arg5[%c168, %c0_68] : memref<288x640xbf16, #tpu.memory_space<vmem>>, vector<8x640xbf16>
    tpu.vector_store %arg5[%c168, %c0_68], %64 {strides = array<i32>} : memref<288x640xbf16, #tpu.memory_space<vmem>>, vector<8x640xbf16>,
    %c0_69 = arith.constant 0 : index
    %c0_70 = arith.constant 0 : index
    %c82 = arith.constant 82 : index
    %66 = vector.load %arg1[%c0_69, %c0_70, %c82] : memref<1x8x896xbf16, #tpu.memory_space<vmem>>, vector<1x8x640xbf16>
    %67 = vector.shape_cast %66 : vector<1x8x640xbf16> to vector<8x640xbf16>
    %c176 = arith.constant 176 : index
    %c0_71 = arith.constant 0 : index
    %68 = vector.load %arg5[%c176, %c0_71] : memref<288x640xbf16, #tpu.memory_space<vmem>>, vector<8x640xbf16>
    tpu.vector_store %arg5[%c176, %c0_71], %67 {strides = array<i32>} : memref<288x640xbf16, #tpu.memory_space<vmem>>, vector<8x640xbf16>,
    %c0_72 = arith.constant 0 : index
    %c0_73 = arith.constant 0 : index
    %c83 = arith.constant 83 : index
    %69 = vector.load %arg1[%c0_72, %c0_73, %c83] : memref<1x8x896xbf16, #tpu.memory_space<vmem>>, vector<1x8x640xbf16>
    %70 = vector.shape_cast %69 : vector<1x8x640xbf16> to vector<8x640xbf16>
    %c184 = arith.constant 184 : index
    %c0_74 = arith.constant 0 : index
    %71 = vector.load %arg5[%c184, %c0_74] : memref<288x640xbf16, #tpu.memory_space<vmem>>, vector<8x640xbf16>
    tpu.vector_store %arg5[%c184, %c0_74], %70 {strides = array<i32>} : memref<288x640xbf16, #tpu.memory_space<vmem>>, vector<8x640xbf16>,
    %c0_75 = arith.constant 0 : index
    %c0_76 = arith.constant 0 : index
    %c104_77 = arith.constant 104 : index
    %72 = vector.load %arg1[%c0_75, %c0_76, %c104_77] : memref<1x8x896xbf16, #tpu.memory_space<vmem>>, vector<1x8x640xbf16>
    %73 = vector.shape_cast %72 : vector<1x8x640xbf16> to vector<8x640xbf16>
    %c192 = arith.constant 192 : index
    %c0_78 = arith.constant 0 : index
    %74 = vector.load %arg5[%c192, %c0_78] : memref<288x640xbf16, #tpu.memory_space<vmem>>, vector<8x640xbf16>
    tpu.vector_store %arg5[%c192, %c0_78], %73 {strides = array<i32>} : memref<288x640xbf16, #tpu.memory_space<vmem>>, vector<8x640xbf16>,
    %c0_79 = arith.constant 0 : index
    %c0_80 = arith.constant 0 : index
    %c105 = arith.constant 105 : index
    %75 = vector.load %arg1[%c0_79, %c0_80, %c105] : memref<1x8x896xbf16, #tpu.memory_space<vmem>>, vector<1x8x640xbf16>
    %76 = vector.shape_cast %75 : vector<1x8x640xbf16> to vector<8x640xbf16>
    %c200 = arith.constant 200 : index
    %c0_81 = arith.constant 0 : index
    %77 = vector.load %arg5[%c200, %c0_81] : memref<288x640xbf16, #tpu.memory_space<vmem>>, vector<8x640xbf16>
    tpu.vector_store %arg5[%c200, %c0_81], %76 {strides = array<i32>} : memref<288x640xbf16, #tpu.memory_space<vmem>>, vector<8x640xbf16>,
    %c0_82 = arith.constant 0 : index
    %c0_83 = arith.constant 0 : index
    %c106 = arith.constant 106 : index
    %78 = vector.load %arg1[%c0_82, %c0_83, %c106] : memref<1x8x896xbf16, #tpu.memory_space<vmem>>, vector<1x8x640xbf16>
    %79 = vector.shape_cast %78 : vector<1x8x640xbf16> to vector<8x640xbf16>
    %c208 = arith.constant 208 : index
    %c0_84 = arith.constant 0 : index
    %80 = vector.load %arg5[%c208, %c0_84] : memref<288x640xbf16, #tpu.memory_space<vmem>>, vector<8x640xbf16>
    tpu.vector_store %arg5[%c208, %c0_84], %79 {strides = array<i32>} : memref<288x640xbf16, #tpu.memory_space<vmem>>, vector<8x640xbf16>,
    %c0_85 = arith.constant 0 : index
    %c0_86 = arith.constant 0 : index
    %c107 = arith.constant 107 : index
    %81 = vector.load %arg1[%c0_85, %c0_86, %c107] : memref<1x8x896xbf16, #tpu.memory_space<vmem>>, vector<1x8x640xbf16>
    %82 = vector.shape_cast %81 : vector<1x8x640xbf16> to vector<8x640xbf16>
    %c216 = arith.constant 216 : index
    %c0_87 = arith.constant 0 : index
    %83 = vector.load %arg5[%c216, %c0_87] : memref<288x640xbf16, #tpu.memory_space<vmem>>, vector<8x640xbf16>
    tpu.vector_store %arg5[%c216, %c0_87], %82 {strides = array<i32>} : memref<288x640xbf16, #tpu.memory_space<vmem>>, vector<8x640xbf16>,
    %c0_88 = arith.constant 0 : index
    %c0_89 = arith.constant 0 : index
    %c108 = arith.constant 108 : index
    %84 = vector.load %arg1[%c0_88, %c0_89, %c108] : memref<1x8x896xbf16, #tpu.memory_space<vmem>>, vector<1x8x640xbf16>
    %85 = vector.shape_cast %84 : vector<1x8x640xbf16> to vector<8x640xbf16>
    %c224 = arith.constant 224 : index
    %c0_90 = arith.constant 0 : index
    %86 = vector.load %arg5[%c224, %c0_90] : memref<288x640xbf16, #tpu.memory_space<vmem>>, vector<8x640xbf16>
    tpu.vector_store %arg5[%c224, %c0_90], %85 {strides = array<i32>} : memref<288x640xbf16, #tpu.memory_space<vmem>>, vector<8x640xbf16>,
    %c0_91 = arith.constant 0 : index
    %c0_92 = arith.constant 0 : index
    %c109 = arith.constant 109 : index
    %87 = vector.load %arg1[%c0_91, %c0_92, %c109] : memref<1x8x896xbf16, #tpu.memory_space<vmem>>, vector<1x8x640xbf16>
    %88 = vector.shape_cast %87 : vector<1x8x640xbf16> to vector<8x640xbf16>
    %c232 = arith.constant 232 : index
    %c0_93 = arith.constant 0 : index
    %89 = vector.load %arg5[%c232, %c0_93] : memref<288x640xbf16, #tpu.memory_space<vmem>>, vector<8x640xbf16>
    tpu.vector_store %arg5[%c232, %c0_93], %88 {strides = array<i32>} : memref<288x640xbf16, #tpu.memory_space<vmem>>, vector<8x640xbf16>,
    %c0_94 = arith.constant 0 : index
    %c0_95 = arith.constant 0 : index
    %c130 = arith.constant 130 : index
    %90 = vector.load %arg1[%c0_94, %c0_95, %c130] : memref<1x8x896xbf16, #tpu.memory_space<vmem>>, vector<1x8x640xbf16>
    %91 = vector.shape_cast %90 : vector<1x8x640xbf16> to vector<8x640xbf16>
    %c240 = arith.constant 240 : index
    %c0_96 = arith.constant 0 : index
    %92 = vector.load %arg5[%c240, %c0_96] : memref<288x640xbf16, #tpu.memory_space<vmem>>, vector<8x640xbf16>
    tpu.vector_store %arg5[%c240, %c0_96], %91 {strides = array<i32>} : memref<288x640xbf16, #tpu.memory_space<vmem>>, vector<8x640xbf16>,
    %c0_97 = arith.constant 0 : index
    %c0_98 = arith.constant 0 : index
    %c131 = arith.constant 131 : index
    %93 = vector.load %arg1[%c0_97, %c0_98, %c131] : memref<1x8x896xbf16, #tpu.memory_space<vmem>>, vector<1x8x640xbf16>
    %94 = vector.shape_cast %93 : vector<1x8x640xbf16> to vector<8x640xbf16>
    %c248 = arith.constant 248 : index
    %c0_99 = arith.constant 0 : index
    %95 = vector.load %arg5[%c248, %c0_99] : memref<288x640xbf16, #tpu.memory_space<vmem>>, vector<8x640xbf16>
    tpu.vector_store %arg5[%c248, %c0_99], %94 {strides = array<i32>} : memref<288x640xbf16, #tpu.memory_space<vmem>>, vector<8x640xbf16>,
    %c0_100 = arith.constant 0 : index
    %c0_101 = arith.constant 0 : index
    %c132 = arith.constant 132 : index
    %96 = vector.load %arg1[%c0_100, %c0_101, %c132] : memref<1x8x896xbf16, #tpu.memory_space<vmem>>, vector<1x8x640xbf16>
    %97 = vector.shape_cast %96 : vector<1x8x640xbf16> to vector<8x640xbf16>
    %c256 = arith.constant 256 : index
    %c0_102 = arith.constant 0 : index
    %98 = vector.load %arg5[%c256, %c0_102] : memref<288x640xbf16, #tpu.memory_space<vmem>>, vector<8x640xbf16>
    tpu.vector_store %arg5[%c256, %c0_102], %97 {strides = array<i32>} : memref<288x640xbf16, #tpu.memory_space<vmem>>, vector<8x640xbf16>,
    %c0_103 = arith.constant 0 : index
    %c0_104 = arith.constant 0 : index
    %c133 = arith.constant 133 : index
    %99 = vector.load %arg1[%c0_103, %c0_104, %c133] : memref<1x8x896xbf16, #tpu.memory_space<vmem>>, vector<1x8x640xbf16>
    %100 = vector.shape_cast %99 : vector<1x8x640xbf16> to vector<8x640xbf16>
    %c264 = arith.constant 264 : index
    %c0_105 = arith.constant 0 : index
    %101 = vector.load %arg5[%c264, %c0_105] : memref<288x640xbf16, #tpu.memory_space<vmem>>, vector<8x640xbf16>
    tpu.vector_store %arg5[%c264, %c0_105], %100 {strides = array<i32>} : memref<288x640xbf16, #tpu.memory_space<vmem>>, vector<8x640xbf16>,
    %c0_106 = arith.constant 0 : index
    %c0_107 = arith.constant 0 : index
    %c134 = arith.constant 134 : index
    %102 = vector.load %arg1[%c0_106, %c0_107, %c134] : memref<1x8x896xbf16, #tpu.memory_space<vmem>>, vector<1x8x640xbf16>
    %103 = vector.shape_cast %102 : vector<1x8x640xbf16> to vector<8x640xbf16>
    %c272 = arith.constant 272 : index
    %c0_108 = arith.constant 0 : index
    %104 = vector.load %arg5[%c272, %c0_108] : memref<288x640xbf16, #tpu.memory_space<vmem>>, vector<8x640xbf16>
    tpu.vector_store %arg5[%c272, %c0_108], %103 {strides = array<i32>} : memref<288x640xbf16, #tpu.memory_space<vmem>>, vector<8x640xbf16>,
    %c0_109 = arith.constant 0 : index
    %c0_110 = arith.constant 0 : index
    %c135 = arith.constant 135 : index
    %105 = vector.load %arg1[%c0_109, %c0_110, %c135] : memref<1x8x896xbf16, #tpu.memory_space<vmem>>, vector<1x8x640xbf16>
    %106 = vector.shape_cast %105 : vector<1x8x640xbf16> to vector<8x640xbf16>
    %c280 = arith.constant 280 : index
    %c0_111 = arith.constant 0 : index
    %107 = vector.load %arg5[%c280, %c0_111] : memref<288x640xbf16, #tpu.memory_space<vmem>>, vector<8x640xbf16>
    tpu.vector_store %arg5[%c280, %c0_111], %106 {strides = array<i32>} : memref<288x640xbf16, #tpu.memory_space<vmem>>, vector<8x640xbf16>,
    %c0_112 = arith.constant 0 : index
    %c0_113 = arith.constant 0 : index
    %108 = vector.load %arg2[%c0_112, %c0_113] : memref<32x288xbf16, #tpu.memory_space<vmem>>, vector<32x288xbf16>
    %c0_114 = arith.constant 0 : index
    %c0_115 = arith.constant 0 : index
    %109 = vector.load %arg5[%c0_114, %c0_115] : memref<288x640xbf16, #tpu.memory_space<vmem>>, vector<288x640xbf16>
    %cst = arith.constant dense<0.000000e+00> : vector<32x640xf32>
    %110 = tpu.matmul %108, %109, %cst {dimension_numbers = #tpu.dot_dimension_numbers<[1], [0], [0], [1], [0, 0, 1, 1], [], []>} : vector<32x288xbf16>, vector<288x640xbf16>, vector<32x640xf32> -> vector<32x640xf32>
    %c0_116 = arith.constant 0 : index
    %c0_117 = arith.constant 0 : index
    %111 = vector.load %arg3[%c0_116, %c0_117] : memref<32x1xf32, #tpu.memory_space<vmem>>, vector<32x1xf32>
    %112 = vector.broadcast %111 : vector<32x1xf32> to vector<32x640xf32>
    %113 = arith.addf %110, %112 : vector<32x640xf32>
    %c0_118 = arith.constant 0 : index
    %c0_119 = arith.constant 0 : index
    %c0_120 = arith.constant 0 : index
    %114 = vector.load %arg4[%c0_118, %c0_119, %c0_120] : memref<1x32x640xf32, #tpu.memory_space<vmem>>, vector<1x32x640xf32>
    %115 = vector.shape_cast %114 : vector<1x32x640xf32> to vector<32x640xf32>
    %116 = vector.shape_cast %113 : vector<32x640xf32> to vector<1x32x640xf32>
    tpu.vector_store %arg4[%c0_118, %c0_119, %c0_120], %116 {strides = array<i32>} : memref<1x32x640xf32, #tpu.memory_space<vmem>>, vector<1x32x640xf32>,
    return
  }
  func.func @transform_0(%arg0: i32) -> (i32, i32, i32) {
    %c0_i32 = arith.constant 0 : i32
    %c0_i32_0 = arith.constant 0 : i32
    %c0_i32_1 = arith.constant 0 : i32
    return %arg0, %c0_i32, %c0_i32_0 : i32, i32, i32
  }
  func.func @transform_1(%arg0: i32) -> (i32, i32) {
    %c0_i32 = arith.constant 0 : i32
    %c0_i32_0 = arith.constant 0 : i32
    %c0_i32_1 = arith.constant 0 : i32
    return %c0_i32, %c0_i32_0 : i32, i32
  }
  func.func @transform_2(%arg0: i32) -> (i32, i32) {
    %c0_i32 = arith.constant 0 : i32
    %c0_i32_0 = arith.constant 0 : i32
    %c0_i32_1 = arith.constant 0 : i32
    return %c0_i32, %c0_i32_0 : i32, i32
  }
  func.func @transform_3(%arg0: i32) -> (i32, i32, i32) {
    %c0_i32 = arith.constant 0 : i32
    %c0_i32_0 = arith.constant 0 : i32
    %c0_i32_1 = arith.constant 0 : i32
    return %arg0, %c0_i32, %c0_i32_0 : i32, i32, i32
  }
}

</mosaic_0001>

<bundles_post_ra>
// kernel: tpu_custom_call.1
= control target key start
LH: loop header
LB: loop body
LE: loop exit
PB: predicated region body
PF: predicated region fallthrough
CT: control target
= control target key end

     0   :  { %8 = vsyncpa [#allocation4], 0  ;;  %s3615_s0 = inlined_call_operand.hbm [shape: bf16[2,8,896], index: 0, kind: input, shape index: {}]   ;;  %s3616_s1 = inlined_call_operand.hbm [shape: bf16[32,288], index: 1, kind: input, shape index: {}]   ;;  %s3617_s2 = inlined_call_operand.vmem [shape: f32[32,1], index: 2, kind: input, shape index: {}]   ;;  %s3618_s3 = inlined_call_operand.hbm [shape: f32[2,32,640], index: 3, kind: output, shape index: {}]  }
   0x1   :  { %10 = vsyncpa [#allocation4 + $0x1], 0 }
   0x2   :  { %11 = vsyncpa [#allocation7], 0 }
   0x3   :  { %12 = vsyncpa [#allocation5], 0 }
   0x4   :  { %14 = vsyncpa [#allocation5 + $0x1], 0  ;;  %s2687_s12 = smov 0   ;;  %s2689_s13 = smov 0  }
   0x5   :  { %s2691_s14 = smov 0   ;;  %s2693_s15 = smov 0  }
   0x6 LB: > { %s2708_s16 = sadd.s32 4294967295, %s2626_s15   ;;  %s2223_s17 = sadd.s32 4294967294, %s2626_s15   ;;  %s2626_s15 = sphi %s2693_s15, %s3640_s15   ;;  %s2622_s14 = sphi %s2691_s14, %s3639_s14   ;;  %s2618_s13 = sphi %s2689_s13, %s3638_s13   ;;  %s2614_s12 = sphi %s2687_s12, %s3637_s12  }
   0x7   : > { %p40_p0 = scmp.ne.s32.totalorder %s2618_s13, %s2614_s12  ;;  %p3619_p1 = scmp.eq.s32.totalorder %s2708_s16, 0 }
   0x8   : > { %p112_p3 = scmp.eq.s32.totalorder %s2223_s17, 1  ;;  %p2224_p5 = scmp.ge.s32.totalorder %s2626_s15, 1 }
   0x9   : > { %p2717_p4 = por %p3619_p1, %p40_p0  ;;  %p119_p7 = scmp.lt.s32.totalorder %s2626_s15, 3 }
   0xa   : > { %p2722_p6 = por %p112_p3, %p40_p0  ;;  %s2628_s21 = smov [#allocation6]  }
   0xb   : > { %s3623_s18 = scalar_select %p2717_p4, 1, 0 }
   0xc   : > { %s3624_s19 = scalar_select %p2722_p6, 1, 0 }
   0xd   : > { %p2727_p8 = pnand %p2224_p5, %p119_p7  ;;  %s131_s22 = sshll.u32 %s2628_s21, 4  ;;  %s132_s22 = int_to_ptr.vmem [resolvable:$true] %s131_s22 }
   0xe   : > { %s2741_s24 = sadd.s32 1, %s2626_s15   ;;  %s27_s25 = sadd.s32 1, %s2622_s14 }
   0xf   : > { %s3625_s20 = scalar_select %p2727_p8, 1, 0 }
  0x10   : > { %p2388_p9 = pneg %p2727_p8  ;;  %s24_s26 = ssub.s32 %s2626_s15, %s2741_s24 }
  0x11   : > { %s2515_s27 = scalar_lea.vmem %s132_s22, 768  ;;  %p2523_p5 = scmp.lt.s32.totalorder %s132_s22, %s132_s22 }
  0x12   : > { %p2736_p11 = pnand %p2388_p9, %p3619_p1  ;;  %p2516_p13 = scmp.ne.s32.totalorder %s132_s22, %s2515_s27 }
  0x13   : > { %p2524_p7 = scmp.lt.s32.totalorder %s2515_s27, %s2515_s27 }
  0x14   : > { %p2506_p12 = pneg %p2736_p11 }
  0x15   : > { %p2525_p10 = por %p2524_p7, %p2523_p5 }
  0x16   : > { %p2518_p0 = pnand %p2516_p13, %p2506_p12 }
  0x18   : > { %p2519_p3 = pneg %p2518_p0 }
  0x1a   : > { %p2526_p2 = pnand %p2525_p10, %p2519_p3 }
  0x1c   : > { %2529 = shalt.err (!%p2526_p2)
}
  0x1d   : > { %s2629_s28 = smov 192   ;;  %s2630_s29 = smov 12  }
  0x1e   : > { %2391 = dma.hbm_to_vmem [thread:$0]  (!%p2736_p11), %s3616_s1, 768, %s132_s22, [#allocation7], %s2629_s28, %s2629_s28, %s2630_s29  }
  0x1f   : > { %p25_p9 = scmp.eq.s32.totalorder %s24_s26, 0  ;;  %p34_p12 = scmp.ne.s32.totalorder %s2622_s14, %s2618_s13 }
  0x20   : > { %p35_p10 = scmp.eq.s32.totalorder %s2626_s15, 0  ;;  %p2401_p2 = scmp.lt.s32.totalorder %s2626_s15, 2 }
  0x21   : > { %s2758_s5 = scalar_select %p25_p9, %s2622_s14, %s27_s25  }
  0x22   : > { %p36_p13 = por %p35_p10, %p34_p12  ;;  %p3627_p0 = scmp.eq.s32.totalorder %s2708_s16, 1 }
  0x23   : > { %s148_s7 = sand.u32 1, %s2622_s14   ;;  %s2376_s8 = smul.u32 448, %s2626_s15 }
  0x24   : > { %p2762_p3 = por %p3627_p0, %p34_p12  ;;  %s2375_s9 = smul.u32 28, %s148_s7 }
  0x25   : > { %p2768_p5 = pnand %p2401_p2, %p36_p13  ;;  %s2775_s21 = scalar_lea.hbm %s3615_s0, %s2376_s8 }
  0x26   : > { %s3628_s6 = scalar_select %p2762_p3, 1, 0 }
  0x27   : > { %s152_s22 = scalar_lea.vmem [#allocation3], %s2375_s9  ;;  %s149_s25 = scalar_lea.sflag [#allocation4], %s148_s7 }
  0x28   : > { %s160_s23 = sshll.u32 %s152_s22, 4  ;;  %s2530_s26 = scalar_lea.hbm %s2775_s21, 448  ;;  %s161_s23 = int_to_ptr.vmem [resolvable:$true] %s160_s23 }
  0x29   : > { %p2531_p11 = scmp.ne.s32.totalorder %s2775_s21, %s2530_s26  ;;  %p2532_p7 = pneg %p2768_p5 }
  0x2a   : > { %s2535_s29 = scalar_lea.hbm %s3615_s0, 896  ;;  %p2536_p10 = scmp.lt.s32.totalorder %s2775_s21, %s3615_s0 }
  0x2b   : > { %p2533_p9 = pnand %p2532_p7, %p2531_p11  ;;  %p2537_p2 = scmp.lt.s32.totalorder %s2535_s29, %s2530_s26 }
  0x2d   : > { %p2534_p12 = pneg %p2533_p9  ;;  %p2538_p13 = por %p2537_p2, %p2536_p10 }
  0x2f   : > { %p2539_p0 = pnand %p2538_p13, %p2534_p12 }
  0x31   : > { %2542 = shalt.err (!%p2539_p0)
}
  0x32   : > { %s2543_s8 = scalar_lea.vmem %s161_s23, 448  ;;  %s2631_s7 = smov [#allocation3]  }
  0x33   : > { %p2544_p1 = scmp.ne.s32.totalorder %s161_s23, %s2543_s8  ;;  %s2548_s9 = sshll.u32 %s2631_s7, 4  ;;  %s2549_s9 = int_to_ptr.vmem [resolvable:$false] %s2548_s9 }
  0x34   : > { %s2550_s11 = scalar_lea.vmem %s2549_s9, 896  ;;  %p2551_p11 = scmp.lt.s32.totalorder %s161_s23, %s2549_s9 }
  0x35   : > { %p2546_p6 = pnand %p2544_p1, %p2532_p7  ;;  %p2552_p9 = scmp.lt.s32.totalorder %s2550_s11, %s2543_s8 }
  0x37   : > { %p2547_p3 = pneg %p2546_p6  ;;  %p2553_p4 = por %p2552_p9, %p2551_p11 }
  0x39   : > { %p2554_p8 = pnand %p2553_p4, %p2547_p3 }
  0x3b   : > { %2557 = shalt.err (!%p2554_p8)
}
  0x3c   : > { %2395 = dma.hbm_to_vmem [thread:$0]  (!%p2768_p5), %s2775_s21, 448, %s161_s23, %s149_s25  }
  0x3d   : > { %p3630_p12 = scmp.ne.s32.totalorder %s3625_s20, 0 }
  0x3e   : > { %s2794_s17 = sand.u32 (!%p3630_p12), 1, %s2618_s13   ;;  %p3631_p1 = scmp.ne.s32.totalorder (!%p3630_p12), %s3623_s18, 0 }
  0x3f   : > { %169 = sbr.rel (%p3630_p12) target bundleno = 645 (0x285), region = 32  ;;  %s172_s26 = scalar_lea.sflag (!%p3630_p12), [#allocation4], %s2794_s17 }
  0x40   : > { %s2377_s22 = smul.u32 (!%p3630_p12), 28, %s2794_s17 }
  0x42   : > { %s2798_s27 = scalar_lea.vmem (!%p3630_p12), [#allocation3], %s2377_s22 }
  0x44   : > { %2601 = dma.done.wait (%p3631_p1), %s172_s26, 448  }
  0x45   : > { %2603 = vsyncadd (%p3631_p1), %s172_s26, 4294966848  ;;  %p3632_p4 = scmp.eq.s32.totalorder %s2708_s16, 0 }
  0x47   : > { %2605 = dma.done.wait (%p3632_p4), [#allocation7], 768   ;;  %p3633_p6 = pmov %p3632_p4 }
  0x48   : > { %v2809_v0 = vld [vmem:[%s2798_s27 + $0x4] sm:$0xff]  ;;  %s2632_s20 = smov 121   ;;  %s2633_s10 = smov 122   ;;  %v2816_v1 = vld [vmem:[%s2798_s27 + $0xc] sm:$0xff]  ;;  %v2636_v4 = vmov 0   ;;  %v2904_v8 = vld [vmem:[%s2798_s27 + $0x14] sm:$0xff] }
  0x49   : > { %2607 = vsyncadd (%p3633_p6), [#allocation7], 4294966528  ;;  %1130 = vrot.lane.b32.xlu1 %v2809_v0, %s2632_s20  ;;  %1103 = vrot.lane.b32.xlu0 %v2809_v0, %s2633_s10  ;;  %s2634_s18 = smov 124   ;;  %s2635_s21 = smov 123   ;;  %v2831_v2 = vld [vmem:[%s2798_s27 + $0x10] sm:$0xff]  ;;  %v2834_v3 = vld [vmem:[%s2798_s27 + $0x8] sm:$0xff] }
  0x4a   : > { %1881 = vmatprep.mubr.bf16.mxu1 %v2636_v4  ;;  %2474 = vset.pattern.permute.xlu0 %v2636_v4  ;;  %s2637_s23 = smov 74   ;;  %s2638_s25 = smov 73   ;;  %v2858_v5 = vld [vmem:[%s2798_s27] sm:$0xff]  ;;  %v2883_v6 = vld [vmem:[%s2798_s27 + $0x8] sm:$0xff]  ;;  %v205_v7 = vld [vmem:[%s2798_s27 + $0x10] sm:$0xf] }
  0x4b   : > { %2473 = vset.pattern.permute.xlu1 %v2636_v4  ;;  %s2639_s28 = smov 76   ;;  %s2640_s29 = smov 75   ;;  %208 = vst [vmem:[#allocation2 + $0x10] sm:$0xf] %v205_v7  ;;  %v2919_v9 = vld [vmem:[%s2798_s27] sm:$0xff]  ;;  %vm224_vm0 = vcmask 1043456  }
  0x4c   : > { %s2641_s30 = smov 98   ;;  %s2642_s4 = smov 97   ;;  %vm1140_vm1 = vcmask 990208   ;;  %vm1113_vm2 = vcmask 998400   ;;  %vm307_vm3 = vcmask 1014784   ;;  %vm334_vm4 = vcmask 1006592  }
  0x4d   : > { %1132 = vrot.lane.b32.xlu1 %v2816_v1, %s2632_s20  ;;  %1105 = vrot.lane.b32.xlu0 %v2816_v1, %s2633_s10  ;;  %s2643_s8 = smov 100   ;;  %s2644_s7 = smov 99   ;;  %vm577_vm5 = vcmask 605184   ;;  %v2475_v44 = vld [vmem:[#allocation6 + $0x8] ss:$12 sps:$4 sm:$0xff]   ;;  %vm604_vm6 = vcmask 596992  }
  0x4e   : > { %s2645_s9 = smov 102   ;;  %s2646_s11 = smov 101   ;;  %vm1789_vm7 = vcmask 261120   ;;  %vm523_vm8 = vcmask 621568   ;;  %vm550_vm9 = vcmask 613376   ;;  %vm469_vm10 = vcmask 801792  }
  0x4f   : > { %s2647_s22 = smov 126   ;;  %s2648_s26 = smov 125   ;;  %vm496_vm11 = vcmask 793600   ;;  %vm415_vm12 = vcmask 818176   ;;  %vm442_vm13 = vcmask 809984   ;;  %vm361_vm14 = vcmask 834560  }
  0x50   : > { %s2652_s27 = smov 22   ;;  %vm388_vm15 = vcmask 826368   ;;  %p3634_p3 = scmp.ne.s32.totalorder %s3628_s6, 0 }
  0x51   : > { %1053 = vrot.lane.b32.xlu1 %v2816_v1, %s2634_s18  ;;  %1051 = vrot.lane.b32.xlu0 %v2809_v0, %s2634_s18 }
  0x55   : > { %1079 = vrot.lane.b32.xlu1 %v2816_v1, %s2635_s21  ;;  %1077 = vrot.lane.b32.xlu0 %v2809_v0, %s2635_s21 }
  0x59   : > { %571 = vrot.lane.b32.xlu1 %v2831_v2, %s2637_s23  ;;  %569 = vrot.lane.b32.xlu0 %v2834_v3, %s2637_s23 }
  0x5d   : > { %598 = vrot.lane.b32.xlu1 %v2831_v2, %s2638_s25  ;;  %596 = vrot.lane.b32.xlu0 %v2834_v3, %s2638_s25 }
  0x61   : > { %517 = vrot.lane.b32.xlu1 %v2831_v2, %s2639_s28  ;;  %515 = vrot.lane.b32.xlu0 %v2834_v3, %s2639_s28 }
  0x65   : > { %544 = vrot.lane.b32.xlu1 %v2831_v2, %s2640_s29  ;;  %542 = vrot.lane.b32.xlu0 %v2834_v3, %s2640_s29 }
  0x69   : > { %463 = vrot.lane.b32.xlu1 %v2831_v2, %s2641_s30  ;;  %461 = vrot.lane.b32.xlu0 %v2834_v3, %s2641_s30 }
  0x6d   : > { %490 = vrot.lane.b32.xlu1 %v2831_v2, %s2642_s4  ;;  %488 = vrot.lane.b32.xlu0 %v2834_v3, %s2642_s4 }
  0x71   : > { %409 = vrot.lane.b32.xlu1 %v2831_v2, %s2643_s8  ;;  %407 = vrot.lane.b32.xlu0 %v2834_v3, %s2643_s8 }
  0x75   : > { %436 = vrot.lane.b32.xlu1 %v2831_v2, %s2644_s7  ;;  %434 = vrot.lane.b32.xlu0 %v2834_v3, %s2644_s7 }
  0x79   : > { %594 = vrot.lane.b32.xlu1 %v2858_v5, %s2638_s25  ;;  %567 = vrot.lane.b32.xlu0 %v2858_v5, %s2637_s23  ;;  %s2649_s23 = smov 127   ;;  %s2650_s25 = smov 20  }
  0x7d   : > { %355 = vrot.lane.b32.xlu1 %v2831_v2, %s2645_s9  ;;  %353 = vrot.lane.b32.xlu0 %v2834_v3, %s2645_s9 }
  0x81   : > { %382 = vrot.lane.b32.xlu1 %v2831_v2, %s2646_s11  ;;  %380 = vrot.lane.b32.xlu0 %v2834_v3, %s2646_s11 }
  0x85   : > { %540 = vrot.lane.b32.xlu1 %v2858_v5, %s2640_s29  ;;  %513 = vrot.lane.b32.xlu0 %v2858_v5, %s2639_s28  ;;  %s2651_s28 = smov 19   ;;  %s2653_s29 = smov 21  }
  0x89   : > { %301 = vrot.lane.b32.xlu1 %v2831_v2, %s2634_s18  ;;  %299 = vrot.lane.b32.xlu0 %v2834_v3, %s2634_s18 }
  0x8d   : > { %328 = vrot.lane.b32.xlu1 %v2831_v2, %s2635_s21  ;;  %326 = vrot.lane.b32.xlu0 %v2834_v3, %s2635_s21 }
  0x91   : > { %486 = vrot.lane.b32.xlu1 %v2858_v5, %s2642_s4  ;;  %459 = vrot.lane.b32.xlu0 %v2858_v5, %s2641_s30  ;;  %s2654_s30 = smov 24   ;;  %s2655_s4 = smov 23  }
  0x95   : > { %247 = vrot.lane.b32.xlu1 %v2831_v2, %s2647_s22  ;;  %245 = vrot.lane.b32.xlu0 %v2834_v3, %s2647_s22 }
  0x99   : > { %274 = vrot.lane.b32.xlu1 %v2831_v2, %s2648_s26  ;;  %272 = vrot.lane.b32.xlu0 %v2834_v3, %s2648_s26 }
  0x9d   : > { %432 = vrot.lane.b32.xlu1 %v2858_v5, %s2644_s7  ;;  %405 = vrot.lane.b32.xlu0 %v2858_v5, %s2643_s8  ;;  %s2656_s8 = smov 46   ;;  %s2657_s7 = smov 45  }
  0xa1   : > { %219 = vrot.lane.b32.xlu1 %v2831_v2, %s2649_s23  ;;  %217 = vrot.lane.b32.xlu0 %v2834_v3, %s2649_s23 }
  0xa5   : > { %378 = vrot.lane.b32.xlu1 %v2858_v5, %s2646_s11  ;;  %351 = vrot.lane.b32.xlu0 %v2858_v5, %s2645_s9  ;;  %s2658_s9 = smov 48   ;;  %s2659_s11 = smov 47  }
  0xa9   : > { %324 = vrot.lane.b32.xlu1 %v2858_v5, %s2635_s21  ;;  %297 = vrot.lane.b32.xlu0 %v2858_v5, %s2634_s18 }
  0xad   : > { %1003 = vrot.lane.b32.xlu1 %v2904_v8, %s2647_s22  ;;  %1001 = vrot.lane.b32.xlu0 %v2816_v1, %s2647_s22 }
  0xb1   : > { %1029 = vrot.lane.b32.xlu1 %v2904_v8, %s2648_s26  ;;  %1027 = vrot.lane.b32.xlu0 %v2816_v1, %s2648_s26 }
  0xb5   : > { %270 = vrot.lane.b32.xlu1 %v2858_v5, %s2648_s26  ;;  %243 = vrot.lane.b32.xlu0 %v2858_v5, %s2647_s22 }
  0xb9   : > { %949 = vrot.lane.b32.xlu1 %v2831_v2, %s2650_s25  ;;  %947 = vrot.lane.b32.xlu0 %v2834_v3, %s2650_s25 }
  0xbb   : > { %v1131_v10 = vpop.permute.xlu1 %1130  ;;  %v1104_v11 = vpop.permute.xlu0 %1103 }
  0xbc   : > { %v1136_v12 = vrot.slane %v1131_v10, 4  ;;  %v1109_v15 = vrot.slane %v1104_v11, 4 }
  0xbd   : > { %976 = vrot.lane.b32.xlu1 %v2831_v2, %s2651_s28  ;;  %974 = vrot.lane.b32.xlu0 %v2834_v3, %s2651_s28 }
  0xbf   : > { %v2929_v13 = vpop.permute.xlu1 %1132  ;;  %v2931_v14 = vpop.permute.xlu0 %1105 }
  0xc0   : > { %v1137_v16 = vrot.slane %v2929_v13, 4  ;;  %v1110_v17 = vrot.slane %v2931_v14, 4 }
  0xc1   : > { %893 = vrot.lane.b32.xlu1 %v2834_v3, %s2652_s27  ;;  %215 = vrot.lane.b32.xlu0 %v2858_v5, %s2649_s23  ;;  %s2662_s23 = smov 72  }
  0xc2   : > { %v1139_v18 = vsel %vm224_vm0, %v1136_v12, %v1137_v16  ;;  %v1112_v19 = vsel %vm224_vm0, %v1109_v15, %v1110_v17 }
  0xc3   : > { %v1141_v20 = vsel %vm1140_vm1, %v1131_v10, %v1139_v18  ;;  %v1114_v21 = vsel %vm1113_vm2, %v1104_v11, %v1112_v19  ;;  %v2947_v22 = vpop.permute.xlu1 %1053  ;;  %v1052_v23 = vpop.permute.xlu0 %1051 }
  0xc4   : > { %v1058_v24 = vrot.slane %v2947_v22, 4  ;;  %v1057_v25 = vrot.slane %v1052_v23, 4  ;;  %v2322_v26 = vcombine.high %v1114_v21, %v1141_v20  ;;  %v2321_v27 = vcombine.low %v1114_v21, %v1141_v20 }
  0xc5   : > { %920 = vrot.lane.b32.xlu1 %v2834_v3, %s2653_s29  ;;  %895 = vrot.lane.b32.xlu0 %v2831_v2, %s2652_s27 }
  0xc6   : > { %v1060_v28 = vsel %vm224_vm0, %v1057_v25, %v1058_v24  ;;  %1861 = vmatprep.subr.bf16.mxu1 %v2322_v26 }
  0xc7   : > { %v1061_v29 = vsel %vm307_vm3, %v1052_v23, %v1060_v28  ;;  %v2958_v30 = vpop.permute.xlu1 %1079  ;;  %v1078_v31 = vpop.permute.xlu0 %1077  ;;  %1862 = vmatpush1.bf16.msra.mxu1 %v2321_v27 }
  0xc8   : > { %v1084_v32 = vrot.slane %v2958_v30, 4  ;;  %v1083_v33 = vrot.slane %v1078_v31, 4 }
  0xc9   : > { %839 = vrot.lane.b32.xlu1 %v2834_v3, %s2654_s30  ;;  %922 = vrot.lane.b32.xlu0 %v2831_v2, %s2653_s29 }
  0xca   : > { %v1086_v34 = vsel %vm224_vm0, %v1083_v33, %v1084_v32 }
  0xcb   : > { %v1087_v35 = vsel %vm334_vm4, %v1078_v31, %v1086_v34  ;;  %v572_v36 = vpop.permute.xlu1 %571  ;;  %v2969_v37 = vpop.permute.xlu0 %569 }
  0xcc   : > { %v575_v38 = vrot.slane %v572_v36, 4  ;;  %v574_v39 = vrot.slane %v2969_v37, 4  ;;  %v2317_v40 = vcombine.high %v1061_v29, %v1087_v35  ;;  %v2316_v41 = vcombine.low %v1061_v29, %v1087_v35 }
  0xcd   : > { %866 = vrot.lane.b32.xlu1 %v2834_v3, %s2655_s4  ;;  %841 = vrot.lane.b32.xlu0 %v2831_v2, %s2654_s30 }
  0xce   : > { %v581_v42 = vsel %vm577_vm5, %v572_v36, %v575_v38  ;;  %v579_v43 = vsel %vm224_vm0, %v574_v39, %v575_v38  ;;  %1863 = vmatprep.subr.bf16.mxu1 %v2317_v40 }
  0xcf   : > { %587 = vst [vmem:[#allocation2 + $0x128] sm:$0xf] %v581_v42  ;;  %v580_v45 = vsel %vm577_vm5, %v2969_v37, %v579_v43  ;;  %v599_v46 = vpop.permute.xlu1 %598  ;;  %v2982_v47 = vpop.permute.xlu0 %596  ;;  %1864 = vmatpush1.bf16.msra.mxu1 %v2316_v41 }
  0xd0   : > { %v602_v48 = vrot.slane %v599_v46, 4  ;;  %v601_v49 = vrot.slane %v2982_v47, 4 }
  0xd1   : > { %999 = vrot.lane.b32.xlu1 %v2809_v0, %s2647_s22  ;;  %868 = vrot.lane.b32.xlu0 %v2831_v2, %s2655_s4  ;;  %s2660_s22 = smov 50  }
  0xd2   : > { %v608_v50 = vsel %vm604_vm6, %v599_v46, %v602_v48  ;;  %v606_v51 = vsel %vm224_vm0, %v601_v49, %v602_v48  ;;  %2326 = vmatmul.mubr.msk.bf16.vlgmr.msra.gmra.mxu1 %vm1789_vm7, %v2475_v44 }
  0xd3   : > { %614 = vst [vmem:[#allocation2 + $0x13c] sm:$0xf] %v608_v50  ;;  %v607_v52 = vsel %vm604_vm6, %v2982_v47, %v606_v51  ;;  %v518_v53 = vpop.permute.xlu1 %517  ;;  %v2996_v54 = vpop.permute.xlu0 %515  ;;  %1891 = vmatprep.mubr.bf16.mxu1 %v2636_v4 }
  0xd4   : > { %v521_v55 = vrot.slane %v518_v53, 4  ;;  %v520_v56 = vrot.slane %v2996_v54, 4  ;;  %v2273_v57 = vcombine.low %v580_v45, %v607_v52  ;;  %v2274_v58 = vcombine.high %v580_v45, %v607_v52 }
  0xd5   : > { %785 = vrot.lane.b32.xlu1 %v2834_v3, %s2656_s8  ;;  %1025 = vrot.lane.b32.xlu0 %v2809_v0, %s2648_s26  ;;  %s2661_s26 = smov 49  }
  0xd6   : > { %v527_v59 = vsel %vm523_vm8, %v518_v53, %v521_v55  ;;  %v525_v60 = vsel %vm224_vm0, %v520_v56, %v521_v55  ;;  %1902 = vmatprep.subr.bf16.mxu1 %v2274_v58 }
  0xd7   : > { %533 = vst [vmem:[#allocation2 + $0x100] sm:$0xf] %v527_v59  ;;  %v526_v61 = vsel %vm523_vm8, %v2996_v54, %v525_v60  ;;  %v545_v62 = vpop.permute.xlu1 %544  ;;  %v3010_v63 = vpop.permute.xlu0 %542  ;;  %1903 = vmatpush1.bf16.msra.mxu1 %v2273_v57 }
  0xd8   : > { %v548_v1 = vrot.slane %v545_v62, 4  ;;  %v547_v7 = vrot.slane %v3010_v63, 4 }
  0xd9   : > { %812 = vrot.lane.b32.xlu1 %v2834_v3, %s2657_s7  ;;  %787 = vrot.lane.b32.xlu0 %v2831_v2, %s2656_s8 }
  0xda   : > { %v554_v0 = vsel %vm550_vm9, %v545_v62, %v548_v1  ;;  %v552_v10 = vsel %vm224_vm0, %v547_v7, %v548_v1 }
  0xdb   : > { %560 = vst [vmem:[#allocation2 + $0x114] sm:$0xf] %v554_v0  ;;  %v553_v11 = vsel %vm550_vm9, %v3010_v63, %v552_v10  ;;  %v464_v12 = vpop.permute.xlu1 %463  ;;  %v3023_v15 = vpop.permute.xlu0 %461 }
  0xdc   : > { %v467_v18 = vrot.slane %v464_v12, 4  ;;  %v466_v19 = vrot.slane %v3023_v15, 4  ;;  %v2268_v20 = vcombine.low %v526_v61, %v553_v11  ;;  %v2269_v21 = vcombine.high %v526_v61, %v553_v11 }
  0xdd   : > { %945 = vrot.lane.b32.xlu1 %v2858_v5, %s2650_s25  ;;  %814 = vrot.lane.b32.xlu0 %v2831_v2, %s2657_s7  ;;  %s2663_s25 = smov 71  }
  0xde   : > { %v473_v23 = vsel %vm469_vm10, %v464_v12, %v467_v18  ;;  %v471_v25 = vsel %vm224_vm0, %v466_v19, %v467_v18  ;;  %1904 = vmatprep.subr.bf16.mxu1 %v2269_v21 }
  0xdf   : > { %479 = vst [vmem:[#allocation2 + $0xd8] sm:$0xf] %v473_v23  ;;  %v472_v26 = vsel %vm469_vm10, %v3023_v15, %v471_v25  ;;  %v491_v27 = vpop.permute.xlu1 %490  ;;  %v3036_v28 = vpop.permute.xlu0 %488  ;;  %1905 = vmatpush1.bf16.msra.mxu1 %v2268_v20 }
  0xe0   : > { %v494_v29 = vrot.slane %v491_v27, 4  ;;  %v493_v31 = vrot.slane %v3036_v28, 4 }
  0xe1   : > { %731 = vrot.lane.b32.xlu1 %v2834_v3, %s2658_s9  ;;  %972 = vrot.lane.b32.xlu0 %v2858_v5, %s2651_s28 }
  0xe2   : > { %v500_v33 = vsel %vm496_vm11, %v491_v27, %v494_v29  ;;  %v498_v34 = vsel %vm224_vm0, %v493_v31, %v494_v29  ;;  %v2476_v29 = vld [vmem:[#allocation6 + $0x20] ss:$12 sps:$4 sm:$0xff]  }
  0xe3   : > { %506 = vst [vmem:[#allocation2 + $0xec] sm:$0xf] %v500_v33  ;;  %v499_v35 = vsel %vm496_vm11, %v3036_v28, %v498_v34  ;;  %v410_v36 = vpop.permute.xlu1 %409  ;;  %v3049_v38 = vpop.permute.xlu0 %407  ;;  %2327 = vmatmul.mubr.msk.bf16.gmra.mxu1 %vm1789_vm7, %v2476_v29 }
  0xe4   : > { %v413_v40 = vrot.slane %v410_v36, 4  ;;  %v412_v41 = vrot.slane %v3049_v38, 4  ;;  %v2263_v42 = vcombine.low %v472_v26, %v499_v35  ;;  %v2264_v43 = vcombine.high %v472_v26, %v499_v35 }
  0xe5   : > { %758 = vrot.lane.b32.xlu1 %v2834_v3, %s2659_s11  ;;  %733 = vrot.lane.b32.xlu0 %v2831_v2, %s2658_s9 }
  0xe6   : > { %v419_v44 = vsel %vm415_vm12, %v410_v36, %v413_v40  ;;  %v417_v45 = vsel %vm224_vm0, %v412_v41, %v413_v40  ;;  %1906 = vmatprep.subr.bf16.mxu1 %v2264_v43 }
  0xe7   : > { %425 = vst [vmem:[#allocation2 + $0xb0] sm:$0xf] %v419_v44  ;;  %v418_v46 = vsel %vm415_vm12, %v3049_v38, %v417_v45  ;;  %v437_v48 = vpop.permute.xlu1 %436  ;;  %v3062_v50 = vpop.permute.xlu0 %434  ;;  %1907 = vmatpush1.bf16.msra.mxu1 %v2263_v42 }
  0xe8   : > { %v440_v51 = vrot.slane %v437_v48, 4  ;;  %v439_v52 = vrot.slane %v3062_v50, 4 }
  0xe9   : > { %891 = vrot.lane.b32.xlu1 %v2858_v5, %s2652_s27  ;;  %760 = vrot.lane.b32.xlu0 %v2831_v2, %s2659_s11 }
  0xea   : > { %v446_v53 = vsel %vm442_vm13, %v437_v48, %v440_v51  ;;  %v444_v55 = vsel %vm224_vm0, %v439_v52, %v440_v51 }
  0xeb   : > { %452 = vst [vmem:[#allocation2 + $0xc4] sm:$0xf] %v446_v53  ;;  %v445_v57 = vsel %vm442_vm13, %v3062_v50, %v444_v55  ;;  %v595_v58 = vpop.permute.xlu1 %594  ;;  %v568_v59 = vpop.permute.xlu0 %567 }
  0xec   : > { %v600_v60 = vrot.slane %v595_v58, 4  ;;  %v573_v61 = vrot.slane %v568_v59, 4  ;;  %v2258_v62 = vcombine.low %v418_v46, %v445_v57  ;;  %v2259_v1 = vcombine.high %v418_v46, %v445_v57 }
  0xed   : > { %677 = vrot.lane.b32.xlu1 %v2834_v3, %s2660_s22  ;;  %918 = vrot.lane.b32.xlu0 %v2858_v5, %s2653_s29 }
  0xee   : > { %v603_v0 = vsel %vm224_vm0, %v600_v60, %v601_v49  ;;  %v576_v10 = vsel %vm224_vm0, %v573_v61, %v574_v39  ;;  %1908 = vmatprep.subr.bf16.mxu1 %v2259_v1  ;;  %v2480_v60 = vld [vmem:[#allocation6 + $0x4] ss:$12 sps:$4 sm:$0xff]  }
  0xef   : > { %v605_v11 = vsel %vm604_vm6, %v595_v58, %v603_v0  ;;  %v578_v12 = vsel %vm577_vm5, %v568_v59, %v576_v10  ;;  %v356_v18 = vpop.permute.xlu1 %355  ;;  %v3087_v20 = vpop.permute.xlu0 %353  ;;  %1909 = vmatpush1.bf16.msra.mxu1 %v2258_v62  ;;  %1934 = vmatprep.mubr.bf16.mxu1 %v2480_v60  ;;  %vm253_vm5 = vcmask 1031168   ;;  %vm280_vm6 = vcmask 1022976  }
  0xf0   : > { %v359_v21 = vrot.slane %v356_v18, 4  ;;  %v358_v23 = vrot.slane %v3087_v20, 4  ;;  %v2272_v47 = vcombine.high %v578_v12, %v605_v11  ;;  %v2271_v25 = vcombine.low %v578_v12, %v605_v11  ;;  %1828 = vmatprep.mubr.bf16.mxu0 %v2480_v60 }
  0xf1   : > { %704 = vrot.lane.b32.xlu1 %v2834_v3, %s2661_s26  ;;  %679 = vrot.lane.b32.xlu0 %v2831_v2, %s2660_s22 }
  0xf2   : > { %v365_v37 = vsel %vm361_vm14, %v356_v18, %v359_v21  ;;  %v363_v39 = vsel %vm224_vm0, %v358_v23, %v359_v21  ;;  %1796 = vmatprep.subr.bf16.mxu0 %v2272_v47 }
  0xf3   : > { %371 = vst [vmem:[#allocation2 + $0x88] sm:$0xf] %v365_v37  ;;  %v364_v49 = vsel %vm361_vm14, %v3087_v20, %v363_v39  ;;  %v383_v26 = vpop.permute.xlu1 %382  ;;  %v3100_v27 = vpop.permute.xlu0 %380  ;;  %1797 = vmatpush1.bf16.msra.mxu0 %v2271_v25 }
  0xf4   : > { %v386_v33 = vrot.slane %v383_v26, 4  ;;  %v385_v34 = vrot.slane %v3100_v27, 4 }
  0xf5   : > { %837 = vrot.lane.b32.xlu1 %v2858_v5, %s2654_s30  ;;  %706 = vrot.lane.b32.xlu0 %v2831_v2, %s2661_s26 }
  0xf6   : > { %v392_v35 = vsel %vm388_vm15, %v383_v26, %v386_v33  ;;  %v390_v36 = vsel %vm224_vm0, %v385_v34, %v386_v33 }
  0xf7   : > { %398 = vst [vmem:[#allocation2 + $0x9c] sm:$0xf] %v392_v35  ;;  %v391_v40 = vsel %vm388_vm15, %v3100_v27, %v390_v36  ;;  %v541_v42 = vpop.permute.xlu1 %540  ;;  %v514_v43 = vpop.permute.xlu0 %513 }
  0xf8   : > { %v546_v44 = vrot.slane %v541_v42, 4  ;;  %v519_v45 = vrot.slane %v514_v43, 4  ;;  %v2253_v46 = vcombine.low %v364_v49, %v391_v40  ;;  %v2254_v48 = vcombine.high %v364_v49, %v391_v40 }
  0xf9   : > { %623 = vrot.lane.b32.xlu1 %v2834_v3, %s2662_s23  ;;  %864 = vrot.lane.b32.xlu0 %v2858_v5, %s2655_s4  ;;  %s2378_s4 = smul.u32 160, %s2794_s17 }
  0xfa   : > { %v549_v51 = vsel %vm224_vm0, %v546_v44, %v547_v7  ;;  %v522_v53 = vsel %vm224_vm0, %v519_v45, %v520_v56  ;;  %1910 = vmatprep.subr.bf16.mxu1 %v2254_v48 }
  0xfb   : > { %v551_v55 = vsel %vm550_vm9, %v541_v42, %v549_v51  ;;  %v524_v57 = vsel %vm523_vm8, %v514_v43, %v522_v53  ;;  %v302_v58 = vpop.permute.xlu1 %301  ;;  %v3126_v59 = vpop.permute.xlu0 %299  ;;  %1911 = vmatpush1.bf16.msra.mxu1 %v2253_v46  ;;  %vm226_vm8 = vcmask 1039360   ;;  %vm955_vm9 = vcmask 162816  }
  0xfc   : > { %v305_v61 = vrot.slane %v302_v58, 4  ;;  %v304_v62 = vrot.slane %v3126_v59, 4  ;;  %v2267_v63 = vcombine.high %v524_v57, %v551_v55  ;;  %v2266_v1 = vcombine.low %v524_v57, %v551_v55 }
  0xfd   : > { %650 = vrot.lane.b32.xlu1 %v2834_v3, %s2663_s25  ;;  %625 = vrot.lane.b32.xlu0 %v2831_v2, %s2662_s23 }
  0xfe   : > { %v311_v54 = vsel %vm307_vm3, %v302_v58, %v305_v61  ;;  %v309_v56 = vsel %vm224_vm0, %v304_v62, %v305_v61  ;;  %1798 = vmatprep.subr.bf16.mxu0 %v2267_v63 }
  0xff   : > { %317 = vst [vmem:[#allocation2 + $0x60] sm:$0xf] %v311_v54  ;;  %v310_v7 = vsel %vm307_vm3, %v3126_v59, %v309_v56  ;;  %v329_v0 = vpop.permute.xlu1 %328  ;;  %v3139_v10 = vpop.permute.xlu0 %326  ;;  %1799 = vmatpush1.bf16.msra.mxu0 %v2266_v1 }
 0x100   : > { %v332_v3 = vrot.slane %v329_v0, 4  ;;  %v331_v11 = vrot.slane %v3139_v10, 4 }
 0x101   : > { %783 = vrot.lane.b32.xlu1 %v2858_v5, %s2656_s8  ;;  %652 = vrot.lane.b32.xlu0 %v2831_v2, %s2663_s25  ;;  %s3523_s8 = scalar_lea.vmem [#allocation8], %s2378_s4 }
 0x102   : > { %v338_v12 = vsel %vm334_vm4, %v329_v0, %v332_v3  ;;  %v336_v18 = vsel %vm224_vm0, %v331_v11, %v332_v3 }
 0x103   : > { %344 = vst [vmem:[#allocation2 + $0x74] sm:$0xf] %v338_v12  ;;  %v337_v21 = vsel %vm334_vm4, %v3139_v10, %v336_v18  ;;  %v487_v47 = vpop.permute.xlu1 %486  ;;  %v460_v25 = vpop.permute.xlu0 %459 }
 0x104   : > { %v492_v37 = vrot.slane %v487_v47, 4  ;;  %v465_v39 = vrot.slane %v460_v25, 4  ;;  %v2248_v49 = vcombine.low %v310_v7, %v337_v21  ;;  %v2249_v26 = vcombine.high %v310_v7, %v337_v21 }
 0x105   : > { %729 = vrot.lane.b32.xlu1 %v2858_v5, %s2658_s9  ;;  %810 = vrot.lane.b32.xlu0 %v2858_v5, %s2657_s7  ;;  %s2379_s7 = smul.u32 2560, %s2708_s16  ;;  %s2140_s9 = sshll.u32 %s3523_s8, 4  ;;  %s3570_s9 = int_to_ptr.vmem [resolvable:$true] %s2140_s9 }
 0x106   : > { %v495_v2 = vsel %vm224_vm0, %v492_v37, %v493_v31  ;;  %v468_v29 = vsel %vm224_vm0, %v465_v39, %v466_v19  ;;  %1912 = vmatprep.subr.bf16.mxu1 %v2249_v26  ;;  %s2127_s16 = scalar_lea.sflag [#allocation5], %s2794_s17 }
 0x107   : > { %v497_v33 = vsel %vm496_vm11, %v487_v47, %v495_v2  ;;  %v470_v35 = vsel %vm469_vm10, %v460_v25, %v468_v29  ;;  %v248_v36 = vpop.permute.xlu1 %247  ;;  %v3164_v40 = vpop.permute.xlu0 %245  ;;  %1913 = vmatpush1.bf16.msra.mxu1 %v2248_v49  ;;  %vm982_vm10 = vcmask 154624   ;;  %vm901_vm11 = vcmask 179200  }
 0x108   : > { %v251_v42 = vrot.slane %v248_v36, 4  ;;  %v250_v43 = vrot.slane %v3164_v40, 4  ;;  %v2262_v28 = vcombine.high %v470_v35, %v497_v33  ;;  %v2261_v44 = vcombine.low %v470_v35, %v497_v33 }
 0x109   : > { %675 = vrot.lane.b32.xlu1 %v2858_v5, %s2660_s22  ;;  %756 = vrot.lane.b32.xlu0 %v2858_v5, %s2659_s11 }
 0x10a   : > { %v257_v15 = vsel %vm253_vm5, %v248_v36, %v251_v42  ;;  %v255_v19 = vsel %vm224_vm0, %v250_v43, %v251_v42  ;;  %1800 = vmatprep.subr.bf16.mxu0 %v2262_v28 }
 0x10b   : > { %263 = vst [vmem:[#allocation2 + $0x38] sm:$0xf] %v257_v15  ;;  %v256_v31 = vsel %vm253_vm5, %v3164_v40, %v255_v19  ;;  %v275_v45 = vpop.permute.xlu1 %274  ;;  %v3177_v46 = vpop.permute.xlu0 %272  ;;  %1801 = vmatpush1.bf16.msra.mxu0 %v2261_v44 }
 0x10c   : > { %v278_v48 = vrot.slane %v275_v45, 4  ;;  %v277_v51 = vrot.slane %v3177_v46, 4 }
 0x10d   : > { %621 = vrot.lane.b32.xlu1 %v2858_v5, %s2662_s23  ;;  %702 = vrot.lane.b32.xlu0 %v2858_v5, %s2661_s26  ;;  %s3568_s26 = scalar_lea.hbm %s3618_s3, %s2379_s7  ;;  %s2558_s23 = scalar_lea.vmem %s3570_s9, 2560 }
 0x10e   : > { %v284_v53 = vsel %vm280_vm6, %v275_v45, %v278_v48  ;;  %v282_v55 = vsel %vm224_vm0, %v277_v51, %v278_v48  ;;  %p2559_p8 = scmp.ne.s32.totalorder %s3570_s9, %s2558_s23 }
 0x10f   : > { %290 = vst [vmem:[#allocation2 + $0x4c] sm:$0xf] %v284_v53  ;;  %v283_v57 = vsel %vm280_vm6, %v3177_v46, %v282_v55  ;;  %v433_v58 = vpop.permute.xlu1 %432  ;;  %v406_v60 = vpop.permute.xlu0 %405 }
 0x110   : > { %v438_v61 = vrot.slane %v433_v58, 4  ;;  %v411_v63 = vrot.slane %v406_v60, 4  ;;  %v2243_v1 = vcombine.low %v256_v31, %v283_v57  ;;  %v2244_v54 = vcombine.high %v256_v31, %v283_v57  ;;  %p2560_p5 = pnand %p2559_p8, %p3634_p3 }
 0x111   : > { %1107 = vrot.lane.b32.xlu1 %v2904_v8, %s2633_s10  ;;  %648 = vrot.lane.b32.xlu0 %v2858_v5, %s2663_s25  ;;  %s2664_s25 = smov [#allocation8]  }
 0x112   : > { %v441_v56 = vsel %vm224_vm0, %v438_v61, %v439_v52  ;;  %v414_v7 = vsel %vm224_vm0, %v411_v63, %v412_v41  ;;  %1914 = vmatprep.subr.bf16.mxu1 %v2244_v54  ;;  %p2561_p7 = pneg %p2560_p5 }
 0x113   : > { %v443_v0 = vsel %vm442_vm13, %v433_v58, %v441_v56  ;;  %v416_v3 = vsel %vm415_vm12, %v406_v60, %v414_v7  ;;  %v220_v12 = vpop.permute.xlu1 %219  ;;  %v3202_v18 = vpop.permute.xlu0 %217  ;;  %1915 = vmatpush1.bf16.msra.mxu1 %v2243_v1  ;;  %vm928_vm12 = vcmask 171008   ;;  %vm847_vm13 = vcmask 195584  }
 0x114   : > { %v223_v21 = vrot.slane %v220_v12, 4  ;;  %v222_v5 = vrot.slane %v3202_v18, 4  ;;  %v2257_v50 = vcombine.high %v416_v3, %v443_v0  ;;  %v2256_v47 = vcombine.low %v416_v3, %v443_v0 }
 0x115   : > { %1055 = vrot.lane.b32.xlu1 %v2904_v8, %s2634_s18  ;;  %1134 = vrot.lane.b32.xlu0 %v2904_v8, %s2632_s20  ;;  %s2562_s20 = sshll.u32 %s2664_s25, 4  ;;  %s2563_s20 = int_to_ptr.vmem [resolvable:$false] %s2562_s20 }
 0x116   : > { %v230_v38 = vsel %vm226_vm8, %v220_v12, %v223_v21  ;;  %v228_v41 = vsel %vm224_vm0, %v222_v5, %v223_v21  ;;  %1802 = vmatprep.subr.bf16.mxu0 %v2257_v50  ;;  %s2564_s10 = scalar_lea.vmem %s2563_s20, 5120  ;;  %p2565_p10 = scmp.lt.s32.totalorder %s3570_s9, %s2563_s20 }
 0x117   : > { %236 = vst [vmem:[#allocation2 + $0x24] sm:$0xf] %v230_v38  ;;  %v229_v52 = vsel %vm226_vm8, %v3202_v18, %v228_v41  ;;  %v379_v25 = vpop.permute.xlu1 %378  ;;  %v352_v37 = vpop.permute.xlu0 %351  ;;  %1803 = vmatpush1.bf16.msra.mxu0 %v2256_v47  ;;  %p2566_p2 = scmp.lt.s32.totalorder %s2564_s10, %s2558_s23 }
 0x118   : > { %v384_v39 = vrot.slane %v379_v25, 4  ;;  %v357_v49 = vrot.slane %v352_v37, 4  ;;  %v2238_v26 = vcombine.low %v2883_v6, %v229_v52  ;;  %v2239_v2 = vcombine.high %v2883_v6, %v229_v52 }
 0x119   : > { %1081 = vrot.lane.b32.xlu0 %v2904_v8, %s2635_s21  ;;  %p2567_p13 = por %p2566_p2, %p2565_p10 }
 0x11a   : > { %v387_v29 = vsel %vm224_vm0, %v384_v39, %v385_v34  ;;  %v360_v33 = vsel %vm224_vm0, %v357_v49, %v358_v23  ;;  %1916 = vmatprep.subr.bf16.mxu1 %v2239_v2 }
 0x11b   : > { %v389_v35 = vsel %vm388_vm15, %v379_v25, %v387_v29  ;;  %v362_v36 = vsel %vm361_vm14, %v352_v37, %v360_v33  ;;  %v325_v42 = vpop.permute.xlu1 %324  ;;  %v298_v28 = vpop.permute.xlu0 %297  ;;  %1917 = vmatpush1.bf16.msra.mxu1 %v2238_v26  ;;  %v1268_v29 = vld [vmem:[%s3617_s2 + $0x8] sm:$0xff]  ;;  %vm874_vm14 = vcmask 187392   ;;  %vm793_vm15 = vcmask 375808   ;;  %p2568_p0 = pnand %p2567_p13, %p2561_p7 }
 0x11c   : > { %v330_v6 = vrot.slane %v325_v42, 4  ;;  %v303_v44 = vrot.slane %v298_v28, 4  ;;  %v2252_v15 = vcombine.high %v362_v36, %v389_v35  ;;  %v2251_v8 = vcombine.low %v362_v36, %v389_v35  ;;  %v1269_v36 = vld [vmem:[%s3617_s2 + $0x10] sm:$0xff] }
 0x11d   : > { %1278 = vperm.xlu0 %2474, %v1268_v29  }
 0x11e   : > { %v333_v27 = vsel %vm224_vm0, %v330_v6, %v331_v11  ;;  %v306_v20 = vsel %vm224_vm0, %v303_v44, %v304_v62  ;;  %1804 = vmatprep.subr.bf16.mxu0 %v2252_v15 }
 0x11f   : > { %v335_v23 = vsel %vm334_vm4, %v325_v42, %v333_v27  ;;  %v308_v34 = vsel %vm307_vm3, %v298_v28, %v306_v20  ;;  %v1004_v19 = vpop.permute.xlu1 %1003  ;;  %v3235_v31 = vpop.permute.xlu0 %1001  ;;  %1805 = vmatpush1.bf16.msra.mxu0 %v2251_v8 }
 0x120   : > { %v1007_v45 = vrot.slane %v1004_v19, 4  ;;  %v1006_v48 = vrot.slane %v3235_v31, 4  ;;  %v2247_v53 = vcombine.high %v308_v34, %v335_v23  ;;  %v2246_v10 = vcombine.low %v308_v34, %v335_v23  ;;  %v1270_v23 = vld [vmem:[%s3617_s2 + $0x18] sm:$0xff] }
 0x122   : > { %v1012_v11 = vsel %vm253_vm5, %v1004_v19, %v1007_v45  ;;  %v1010_v59 = vsel %vm224_vm0, %v1006_v48, %v1007_v45  ;;  %1806 = vmatprep.subr.bf16.mxu0 %v2247_v53 }
 0x123   : > { %1018 = vst [vmem:[#allocation2 + $0x268] sm:$0xf] %v1012_v11  ;;  %v1011_v62 = vsel %vm253_vm5, %v3235_v31, %v1010_v59  ;;  %v1030_v55 = vpop.permute.xlu1 %1029  ;;  %v3244_v57 = vpop.permute.xlu0 %1027  ;;  %1807 = vmatpush1.bf16.msra.mxu0 %v2246_v10 }
 0x124   : > { %v1033_v58 = vrot.slane %v1030_v55, 4  ;;  %v1032_v60 = vrot.slane %v3244_v57, 4 }
 0x126   : > { %v1038_v61 = vsel %vm280_vm6, %v1030_v55, %v1033_v58  ;;  %v1036_v63 = vsel %vm224_vm0, %v1032_v60, %v1033_v58 }
 0x127   : > { %1044 = vst [vmem:[#allocation2 + $0x27c] sm:$0xf] %v1038_v61  ;;  %v1037_v1 = vsel %vm280_vm6, %v3244_v57, %v1036_v63  ;;  %v271_v54 = vpop.permute.xlu1 %270  ;;  %v244_v56 = vpop.permute.xlu0 %243 }
 0x128   : > { %v276_v7 = vrot.slane %v271_v54, 4  ;;  %v249_v0 = vrot.slane %v244_v56, 4  ;;  %v2313_v3 = vcombine.low %v1011_v62, %v1037_v1  ;;  %v2314_v12 = vcombine.high %v1011_v62, %v1037_v1 }
 0x12a   : > { %v279_v21 = vsel %vm224_vm0, %v276_v7, %v277_v51  ;;  %v252_v50 = vsel %vm224_vm0, %v249_v0, %v250_v43  ;;  %1918 = vmatprep.subr.bf16.mxu1 %v2314_v12  ;;  %v1267_v43 = vld [vmem:[%s3617_s2] sm:$0xff] }
 0x12b   : > { %v281_v47 = vsel %vm280_vm6, %v271_v54, %v279_v21  ;;  %v254_v38 = vsel %vm253_vm5, %v244_v56, %v252_v50  ;;  %v950_v41 = vpop.permute.xlu1 %949  ;;  %v3261_v52 = vpop.permute.xlu0 %947  ;;  %1919 = vmatpush2.bf16.msra.mxu1 %v2313_v3  ;;  %1273 = vperm.xlu1 %2473, %v1267_v43  }
 0x12c   : > { %v953_v25 = vrot.slane %v950_v41, 4  ;;  %v952_v37 = vrot.slane %v3261_v52, 4  ;;  %v2242_v46 = vcombine.high %v254_v38, %v281_v47  ;;  %v2241_v39 = vcombine.low %v254_v38, %v281_v47 }
 0x12e   : > { %v959_v51 = vsel %vm955_vm9, %v950_v41, %v953_v25  ;;  %v957_v40 = vsel %vm224_vm0, %v952_v37, %v953_v25  ;;  %1808 = vmatprep.subr.bf16.mxu0 %v2242_v46 }
 0x12f   : > { %965 = vst [vmem:[#allocation2 + $0x240] sm:$0xf] %v959_v51  ;;  %v958_v49 = vsel %vm955_vm9, %v3261_v52, %v957_v40  ;;  %v977_v26 = vpop.permute.xlu1 %976  ;;  %v3273_v2 = vpop.permute.xlu0 %974  ;;  %1809 = vmatpush1.bf16.msra.mxu0 %v2241_v39  ;;  %1283 = vperm.xlu1 %2473, %v1269_v36  }
 0x130   : > { %v980_v33 = vrot.slane %v977_v26, 4  ;;  %v979_v35 = vrot.slane %v3273_v2, 4 }
 0x132   : > { %v986_v42 = vsel %vm982_vm10, %v977_v26, %v980_v33  ;;  %v984_v28 = vsel %vm224_vm0, %v979_v35, %v980_v33 }
 0x133   : > { %992 = vst [vmem:[#allocation2 + $0x254] sm:$0xf] %v986_v42  ;;  %v985_v6 = vsel %vm982_vm10, %v3273_v2, %v984_v28  ;;  %v3288_v44 = vpop.permute.xlu1 %893  ;;  %v216_v15 = vpop.permute.xlu0 %215  ;;  %1288 = vperm.xlu1 %2473, %v1270_v23  }
 0x134   : > { %v221_v8 = vrot.slane %v216_v15, 4  ;;  %v2308_v27 = vcombine.low %v958_v49, %v985_v6  ;;  %v2309_v20 = vcombine.high %v958_v49, %v985_v6  ;;  %v898_v34 = vrot.slane %v3288_v44, 4 }
 0x136   : > { %v225_v19 = vsel %vm224_vm0, %v221_v8, %v222_v5  ;;  %1920 = vmatprep.subr.bf16.mxu1 %v2309_v20 }
 0x137   : > { %v227_v45 = vsel %vm226_vm8, %v216_v15, %v225_v19  ;;  %v3298_v53 = vpop.permute.xlu1 %920  ;;  %v896_v10 = vpop.permute.xlu0 %895  ;;  %1921 = vmatpush2.bf16.msra.mxu1 %v2308_v27  ;;  %vm766_vm8 = vcmask 384000  }
 0x138   : > { %v899_v11 = vrot.slane %v896_v10, 4  ;;  %v2237_v59 = vcombine.high %v2919_v9, %v227_v45  ;;  %v2236_v62 = vcombine.low %v2919_v9, %v227_v45  ;;  %v925_v55 = vrot.slane %v3298_v53, 4 }
 0x13a   : > { %v903_v18 = vsel %vm224_vm0, %v898_v34, %v899_v11  ;;  %v905_v5 = vsel %vm901_vm11, %v896_v10, %v899_v11  ;;  %1810 = vmatprep.subr.bf16.mxu0 %v2237_v59 }
 0x13b   : > { %v904_v58 = vsel %vm901_vm11, %v3288_v44, %v903_v18  ;;  %911 = vst [vmem:[#allocation2 + $0x218] sm:$0xf] %v905_v5  ;;  %v3309_v61 = vpop.permute.xlu1 %839  ;;  %v923_v63 = vpop.permute.xlu0 %922  ;;  %1811 = vmatpush1.bf16.msra.mxu0 %v2236_v62 }
 0x13c   : > { %v926_v1 = vrot.slane %v923_v63, 4  ;;  %v844_v9 = vrot.slane %v3309_v61, 4 }
 0x13e   : > { %v930_v54 = vsel %vm224_vm0, %v925_v55, %v926_v1  ;;  %v932_v56 = vsel %vm928_vm12, %v923_v63, %v926_v1 }
 0x13f   : > { %v931_v7 = vsel %vm928_vm12, %v3298_v53, %v930_v54  ;;  %938 = vst [vmem:[#allocation2 + $0x22c] sm:$0xf] %v932_v56  ;;  %v3318_v0 = vpop.permute.xlu1 %866  ;;  %v842_v3 = vpop.permute.xlu0 %841 }
 0x140   : > { %v845_v12 = vrot.slane %v842_v3, 4  ;;  %v2303_v21 = vcombine.low %v904_v58, %v931_v7  ;;  %v2304_v50 = vcombine.high %v904_v58, %v931_v7  ;;  %v871_v47 = vrot.slane %v3318_v0, 4 }
 0x142   : > { %v849_v38 = vsel %vm224_vm0, %v844_v9, %v845_v12  ;;  %v851_v41 = vsel %vm847_vm13, %v842_v3, %v845_v12  ;;  %1922 = vmatprep.subr.bf16.mxu1 %v2304_v50 }
 0x143   : > { %v850_v25 = vsel %vm847_vm13, %v3309_v61, %v849_v38  ;;  %857 = vst [vmem:[#allocation2 + $0x1f0] sm:$0xf] %v851_v41  ;;  %v1000_v46 = vpop.permute.xlu1 %999  ;;  %v869_v39 = vpop.permute.xlu0 %868  ;;  %1923 = vmatpush2.bf16.msra.mxu1 %v2303_v21 }
 0x144   : > { %v1005_v51 = vrot.slane %v1000_v46, 4  ;;  %v872_v40 = vrot.slane %v869_v39, 4 }
 0x146   : > { %v1008_v43 = vsel %vm224_vm0, %v1005_v51, %v1006_v48  ;;  %v876_v49 = vsel %vm224_vm0, %v871_v47, %v872_v40  ;;  %v878_v26 = vsel %vm874_vm14, %v869_v39, %v872_v40 }
 0x147   : > { %v1009_v29 = vsel %vm253_vm5, %v1000_v46, %v1008_v43  ;;  %v877_v33 = vsel %vm874_vm14, %v3318_v0, %v876_v49  ;;  %884 = vst [vmem:[#allocation2 + $0x204] sm:$0xf] %v878_v26  ;;  %v3337_v36 = vpop.permute.xlu1 %785  ;;  %v1026_v42 = vpop.permute.xlu0 %1025  ;;  %vm820_vm5 = vcmask 367616  }
 0x148   : > { %v1031_v28 = vrot.slane %v1026_v42, 4  ;;  %v2298_v6 = vcombine.low %v850_v25, %v877_v33  ;;  %v2299_v31 = vcombine.high %v850_v25, %v877_v33  ;;  %v790_v48 = vrot.slane %v3337_v36, 4 }
 0x14a   : > { %v1034_v15 = vsel %vm224_vm0, %v1031_v28, %v1032_v60  ;;  %1924 = vmatprep.subr.bf16.mxu1 %v2299_v31 }
 0x14b   : > { %v1035_v8 = vsel %vm280_vm6, %v1026_v42, %v1034_v15  ;;  %v3344_v27 = vpop.permute.xlu1 %812  ;;  %v788_v20 = vpop.permute.xlu0 %787  ;;  %1925 = vmatpush2.bf16.msra.mxu1 %v2298_v6  ;;  %vm739_vm6 = vcmask 392192  }
 0x14c   : > { %v791_v23 = vrot.slane %v788_v20, 4  ;;  %v2312_v19 = vcombine.high %v1009_v29, %v1035_v8  ;;  %v2311_v45 = vcombine.low %v1009_v29, %v1035_v8  ;;  %v817_v10 = vrot.slane %v3344_v27, 4 }
 0x14e   : > { %v795_v11 = vsel %vm224_vm0, %v790_v48, %v791_v23  ;;  %v797_v57 = vsel %vm793_vm15, %v788_v20, %v791_v23  ;;  %1812 = vmatprep.subr.bf16.mxu0 %v2312_v19 }
 0x14f   : > { %v796_v60 = vsel %vm793_vm15, %v3337_v36, %v795_v11  ;;  %803 = vst [vmem:[#allocation2 + $0x1c8] sm:$0xf] %v797_v57  ;;  %v946_v59 = vpop.permute.xlu1 %945  ;;  %v815_v62 = vpop.permute.xlu0 %814  ;;  %1813 = vmatpush2.bf16.msra.mxu0 %v2311_v45 }
 0x150   : > { %v951_v18 = vrot.slane %v946_v59, 4  ;;  %v818_v5 = vrot.slane %v815_v62, 4 }
 0x152   : > { %v954_v58 = vsel %vm224_vm0, %v951_v18, %v952_v37  ;;  %v822_v63 = vsel %vm224_vm0, %v817_v10, %v818_v5  ;;  %v824_v1 = vsel %vm820_vm5, %v815_v62, %v818_v5 }
 0x153   : > { %v956_v54 = vsel %vm955_vm9, %v946_v59, %v954_v58  ;;  %v823_v56 = vsel %vm820_vm5, %v3344_v27, %v822_v63  ;;  %830 = vst [vmem:[#allocation2 + $0x1dc] sm:$0xf] %v824_v1  ;;  %v3363_v7 = vpop.permute.xlu1 %731  ;;  %v973_v3 = vpop.permute.xlu0 %972  ;;  %vm685_vm9 = vcmask 408576   ;;  %v2481_v27 = vld [vmem:[#allocation2 + $0x128] ss:$20 sps:$4 sm:$0xff]  }
 0x154   : > { %v978_v12 = vrot.slane %v973_v3, 4  ;;  %v2293_v21 = vcombine.low %v796_v60, %v823_v56  ;;  %v2294_v52 = vcombine.high %v796_v60, %v823_v56  ;;  %v736_v37 = vrot.slane %v3363_v7, 4 }
 0x156   : > { %v981_v50 = vsel %vm224_vm0, %v978_v12, %v979_v35  ;;  %1926 = vmatprep.subr.bf16.mxu1 %v2294_v52 }
 0x157   : > { %v983_v38 = vsel %vm982_vm10, %v973_v3, %v981_v50  ;;  %v3370_v41 = vpop.permute.xlu1 %758  ;;  %v734_v25 = vpop.permute.xlu0 %733  ;;  %1927 = vmatpush2.bf16.msra.mxu1 %v2293_v21  ;;  %vm712_vm10 = vcmask 400384  }
 0x158   : > { %v737_v46 = vrot.slane %v734_v25, 4  ;;  %v2307_v39 = vcombine.high %v956_v54, %v983_v38  ;;  %v2306_v51 = vcombine.low %v956_v54, %v983_v38  ;;  %v763_v40 = vrot.slane %v3370_v41, 4 }
 0x15a   : > { %v741_v43 = vsel %vm224_vm0, %v736_v37, %v737_v46  ;;  %v743_v2 = vsel %vm739_vm6, %v734_v25, %v737_v46  ;;  %1814 = vmatprep.subr.bf16.mxu0 %v2307_v39 }
 0x15b   : > { %v742_v35 = vsel %vm739_vm6, %v3363_v7, %v741_v43  ;;  %749 = vst [vmem:[#allocation2 + $0x1a0] sm:$0xf] %v743_v2  ;;  %v892_v49 = vpop.permute.xlu1 %891  ;;  %v761_v26 = vpop.permute.xlu0 %760  ;;  %1815 = vmatpush2.bf16.msra.mxu0 %v2306_v51 }
 0x15c   : > { %v897_v29 = vrot.slane %v892_v49, 4  ;;  %v764_v33 = vrot.slane %v761_v26, 4 }
 0x15e   : > { %v900_v42 = vsel %vm224_vm0, %v897_v29, %v898_v34  ;;  %v768_v28 = vsel %vm224_vm0, %v763_v40, %v764_v33  ;;  %v770_v6 = vsel %vm766_vm8, %v761_v26, %v764_v33 }
 0x15f   : > { %v902_v31 = vsel %vm901_vm11, %v892_v49, %v900_v42  ;;  %v769_v15 = vsel %vm766_vm8, %v3370_v41, %v768_v28  ;;  %776 = vst [vmem:[#allocation2 + $0x1b4] sm:$0xf] %v770_v6  ;;  %v3389_v8 = vpop.permute.xlu1 %677  ;;  %v919_v20 = vpop.permute.xlu0 %918  ;;  %vm631_vm11 = vcmask 588800   ;;  %v2483_v41 = vld [vmem:[#allocation2 + $0x100] ss:$20 sps:$4 sm:$0xff]  }
 0x160   : > { %v924_v23 = vrot.slane %v919_v20, 4  ;;  %v2288_v19 = vcombine.low %v742_v35, %v769_v15  ;;  %v2289_v44 = vcombine.high %v742_v35, %v769_v15  ;;  %v682_v34 = vrot.slane %v3389_v8, 4 }
 0x162   : > { %v927_v45 = vsel %vm224_vm0, %v924_v23, %v925_v55  ;;  %1928 = vmatprep.subr.bf16.mxu1 %v2289_v44 }
 0x163   : > { %v929_v11 = vsel %vm928_vm12, %v919_v20, %v927_v45  ;;  %v3396_v57 = vpop.permute.xlu1 %704  ;;  %v680_v60 = vpop.permute.xlu0 %679  ;;  %1929 = vmatpush2.bf16.msra.mxu1 %v2288_v19  ;;  %vm658_vm12 = vcmask 580608  }
 0x164   : > { %v683_v59 = vrot.slane %v680_v60, 4  ;;  %v2302_v62 = vcombine.high %v902_v31, %v929_v11  ;;  %v2301_v18 = vcombine.low %v902_v31, %v929_v11  ;;  %v709_v5 = vrot.slane %v3396_v57, 4 }
 0x166   : > { %v687_v58 = vsel %vm224_vm0, %v682_v34, %v683_v59  ;;  %v689_v53 = vsel %vm685_vm9, %v680_v60, %v683_v59  ;;  %1816 = vmatprep.subr.bf16.mxu0 %v2302_v62 }
 0x167   : > { %v688_v55 = vsel %vm685_vm9, %v3389_v8, %v687_v58  ;;  %695 = vst [vmem:[#allocation2 + $0x178] sm:$0xf] %v689_v53  ;;  %v838_v63 = vpop.permute.xlu1 %837  ;;  %v707_v1 = vpop.permute.xlu0 %706  ;;  %1817 = vmatpush2.bf16.msra.mxu0 %v2301_v18  ;;  %v2477_v53 = vld [vmem:[#allocation2 + $0x268] ss:$20 sps:$4 sm:$0xff]  }
 0x168   : > { %v843_v54 = vrot.slane %v838_v63, 4  ;;  %v710_v56 = vrot.slane %v707_v1, 4 }
 0x16a   : > { %v846_v3 = vsel %vm224_vm0, %v843_v54, %v844_v9  ;;  %v714_v12 = vsel %vm224_vm0, %v709_v5, %v710_v56  ;;  %v716_v21 = vsel %vm712_vm10, %v707_v1, %v710_v56 }
 0x16b   : > { %v848_v52 = vsel %vm847_vm13, %v838_v63, %v846_v3  ;;  %v715_v50 = vsel %vm712_vm10, %v3396_v57, %v714_v12  ;;  %722 = vst [vmem:[#allocation2 + $0x18c] sm:$0xf] %v716_v21  ;;  %v3415_v38 = vpop.permute.xlu1 %623  ;;  %v865_v25 = vpop.permute.xlu0 %864  ;;  %v3451_v21 = vld [vmem:[#allocation6 + $0x1c] ss:$12 sps:$4 sm:$0xff]   ;;  %v2485_v57 = vld [vmem:[#allocation2 + $0xd8] ss:$20 sps:$4 sm:$0xff]  }
 0x16c   : > { %v870_v46 = vrot.slane %v865_v25, 4  ;;  %v2283_v39 = vcombine.low %v688_v55, %v715_v50  ;;  %v2284_v61 = vcombine.high %v688_v55, %v715_v50  ;;  %v628_v9 = vrot.slane %v3415_v38, 4  ;;  %v3447_v55 = vld [vmem:[#allocation6] ss:$12 sps:$4 sm:$0xff]  }
 0x16d   : > { %v2482_v50 = vld [vmem:[#allocation2 + $0x240] ss:$20 sps:$4 sm:$0xff]  }
 0x16e   : > { %v873_v51 = vsel %vm224_vm0, %v870_v46, %v871_v47  ;;  %1930 = vmatprep.subr.bf16.mxu1 %v2284_v61 }
 0x16f   : > { %v875_v43 = vsel %vm874_vm14, %v865_v25, %v873_v51  ;;  %v3422_v2 = vpop.permute.xlu1 %650  ;;  %v626_v35 = vpop.permute.xlu0 %625  ;;  %1931 = vmatpush2.bf16.msra.mxu1 %v2283_v39 }
 0x170   : > { %v629_v49 = vrot.slane %v626_v35, 4  ;;  %v2297_v26 = vcombine.high %v848_v52, %v875_v43  ;;  %v2296_v29 = vcombine.low %v848_v52, %v875_v43  ;;  %v655_v33 = vrot.slane %v3422_v2, 4 }
 0x172   : > { %v633_v42 = vsel %vm224_vm0, %v628_v9, %v629_v49  ;;  %v635_v0 = vsel %vm631_vm11, %v626_v35, %v629_v49  ;;  %1818 = vmatprep.subr.bf16.mxu0 %v2297_v26  ;;  %v2484_v49 = vld [vmem:[#allocation2 + $0x218] ss:$20 sps:$4 sm:$0xff]  }
 0x173   : > { %v634_v47 = vsel %vm631_vm11, %v3415_v38, %v633_v42  ;;  %641 = vst [vmem:[#allocation2 + $0x150] sm:$0xf] %v635_v0  ;;  %v784_v28 = vpop.permute.xlu1 %783  ;;  %v653_v6 = vpop.permute.xlu0 %652  ;;  %1819 = vmatpush2.bf16.msra.mxu0 %v2296_v29  ;;  %v3469_v26 = vld [vmem:[#allocation6 + $0x18] ss:$12 sps:$4 sm:$0xff]  }
 0x174   : > { %v789_v31 = vrot.slane %v784_v28, 4  ;;  %v656_v15 = vrot.slane %v653_v6, 4 }
 0x176   : > { %v792_v20 = vsel %vm224_vm0, %v789_v31, %v790_v48  ;;  %v660_v23 = vsel %vm224_vm0, %v655_v33, %v656_v15  ;;  %v662_v19 = vsel %vm658_vm12, %v653_v6, %v656_v15 }
 0x177   : > { %v794_v44 = vsel %vm793_vm15, %v784_v28, %v792_v20  ;;  %v661_v45 = vsel %vm658_vm12, %v3422_v2, %v660_v23  ;;  %668 = vst [vmem:[#allocation2 + $0x164] sm:$0xf] %v662_v19  ;;  %v730_v11 = vpop.permute.xlu1 %729  ;;  %v811_v60 = vpop.permute.xlu0 %810  ;;  %v2486_v20 = vld [vmem:[#allocation2 + $0x1f0] ss:$20 sps:$4 sm:$0xff]  }
 0x178   : > { %v735_v59 = vrot.slane %v730_v11, 4  ;;  %v816_v62 = vrot.slane %v811_v60, 4  ;;  %v2278_v18 = vcombine.low %v634_v47, %v661_v45  ;;  %v2279_v36 = vcombine.high %v634_v47, %v661_v45 }
 0x17a   : > { %v738_v48 = vsel %vm224_vm0, %v735_v59, %v736_v37  ;;  %v819_v58 = vsel %vm224_vm0, %v816_v62, %v817_v10  ;;  %1932 = vmatprep.subr.bf16.mxu1 %v2279_v36  ;;  %v2487_v59 = vld [vmem:[#allocation2 + $0xb0] ss:$20 sps:$4 sm:$0xff]  }
 0x17b   : > { %v740_v63 = vsel %vm739_vm6, %v730_v11, %v738_v48  ;;  %v821_v1 = vsel %vm820_vm5, %v811_v60, %v819_v58  ;;  %v676_v54 = vpop.permute.xlu1 %675  ;;  %v757_v56 = vpop.permute.xlu0 %756  ;;  %1933 = vmatpush2.bf16.msra.mxu1 %v2278_v18  ;;  %v2488_v48 = vld [vmem:[#allocation2 + $0x1c8] ss:$20 sps:$4 sm:$0xff]  }
 0x17c   : > { %v681_v3 = vrot.slane %v676_v54, 4  ;;  %v762_v12 = vrot.slane %v757_v56, 4  ;;  %2335 = vmatprep.subr.bf16.mxu1 %v2477_v53  ;;  %v2292_v7 = vcombine.high %v794_v44, %v821_v1  ;;  %v2291_v37 = vcombine.low %v794_v44, %v821_v1 }
 0x17e   : > { %v684_v10 = vsel %vm224_vm0, %v681_v3, %v682_v34  ;;  %v765_v52 = vsel %vm224_vm0, %v762_v12, %v763_v40  ;;  %1820 = vmatprep.subr.bf16.mxu0 %v2292_v7  ;;  %1935 = vmatmul.mubr.bf16.vlgmr.msra.gmra.mxu1 %v3447_v55 }
 0x17f   : > { %v686_v25 = vsel %vm685_vm9, %v676_v54, %v684_v10  ;;  %v767_v46 = vsel %vm766_vm8, %v757_v56, %v765_v52  ;;  %v622_v39 = vpop.permute.xlu1 %621  ;;  %v703_v61 = vpop.permute.xlu0 %702  ;;  %1821 = vmatpush2.bf16.msra.mxu0 %v2291_v37  ;;  %2336 = vmatpush3.bf16.msra.mxu1 %v2481_v27  ;;  %v2491_v37 = vld [vmem:[#allocation2 + $0x60] ss:$20 sps:$4 sm:$0xff]   ;;  %v2494_v27 = vld [vmem:[#allocation2 + $0x178] ss:$20 sps:$4 sm:$0xff]   ;;  %v2499_v52 = vld [vmem:[#allocation2 + $0x10] ss:$20 sps:$4 sm:$0xff]  }
 0x180   : > { %v627_v51 = vrot.slane %v622_v39, 4  ;;  %v708_v8 = vrot.slane %v703_v61, 4  ;;  %2337 = vmatprep.subr.bf16.mxu1 %v2482_v50  ;;  %v2287_v34 = vcombine.high %v740_v63, %v767_v46  ;;  %v2286_v43 = vcombine.low %v740_v63, %v767_v46  ;;  %1944 = vmatprep.mubr.bf16.mxu1 %v3451_v21  ;;  %v2497_v10 = vld [vmem:[#allocation2 + $0x38] ss:$20 sps:$4 sm:$0xff]   ;;  %v2503_v46 = vld [vmem:[#allocation6 + $0x20] ss:$12 sps:$4 sm:$0xff]  }
 0x182   : > { %v630_v40 = vsel %vm224_vm0, %v627_v51, %v628_v9  ;;  %v711_v35 = vsel %vm224_vm0, %v708_v8, %v709_v5  ;;  %1822 = vmatprep.subr.bf16.mxu0 %v2287_v34 }
 0x183   : > { %v632_v29 = vsel %vm631_vm11, %v622_v39, %v630_v40  ;;  %v713_v42 = vsel %vm712_vm10, %v703_v61, %v711_v35  ;;  %v1108_v0 = vpop.permute.xlu1 %1107  ;;  %v649_v47 = vpop.permute.xlu0 %648  ;;  %1823 = vmatpush2.bf16.msra.mxu0 %v2286_v43  ;;  %2338 = vmatpush3.bf16.msra.mxu1 %v2483_v41 }
 0x184   : > { %v1111_v28 = vrot.slane %v1108_v0, 4  ;;  %v654_v38 = vrot.slane %v649_v47, 4  ;;  %2339 = vmatprep.subr.bf16.mxu1 %v2484_v49  ;;  %v2282_v9 = vcombine.high %v686_v25, %v713_v42  ;;  %v2281_v6 = vcombine.low %v686_v25, %v713_v42  ;;  %v2502_v25 = vld [vmem:[#allocation6 + $0x8] ss:$12 sps:$4 sm:$0xff]  }
 0x186   : > { %v1115_v5 = vsel %vm224_vm0, %v1110_v17, %v1111_v28  ;;  %v1117_v31 = vsel %vm1113_vm2, %v1108_v0, %v1111_v28  ;;  %v657_v15 = vsel %vm224_vm0, %v654_v38, %v655_v33  ;;  %1824 = vmatprep.subr.bf16.mxu0 %v2282_v9  ;;  %1945 = vmatmul.mubr.bf16.gmra.mxu1 %v3469_v26  ;;  %v2501_v33 = vld [vmem:[#allocation6 + $0x4] ss:$12 sps:$4 sm:$0xff]  }
 0x187   : > { %v1116_v23 = vsel %vm1113_vm2, %v2931_v14, %v1115_v5  ;;  %1123 = vst [vmem:[#allocation2 + $0x2b8] sm:$0xf] %v1117_v31  ;;  %v659_v19 = vsel %vm658_vm12, %v649_v47, %v657_v15  ;;  %v1056_v44 = vpop.permute.xlu1 %1055  ;;  %v1135_v45 = vpop.permute.xlu0 %1134  ;;  %1825 = vmatpush2.bf16.msra.mxu0 %v2281_v6  ;;  %2340 = vmatpush3.bf16.msra.mxu1 %v2485_v57 }
 0x188   : > { %v1059_v17 = vrot.slane %v1056_v44, 4  ;;  %v1138_v11 = vrot.slane %v1135_v45, 4  ;;  %2341 = vmatprep.subr.bf16.mxu1 %v2486_v20  ;;  %v2277_v2 = vcombine.high %v632_v29, %v659_v19  ;;  %v2276_v60 = vcombine.low %v632_v29, %v659_v19  ;;  %2040 = vmatprep.mubr.bf16.mxu1 %v2501_v33 }
 0x18a   : > { %v1062_v62 = vsel %vm224_vm0, %v1058_v24, %v1059_v17  ;;  %v1064_v14 = vsel %vm307_vm3, %v1056_v44, %v1059_v17  ;;  %v1142_v18 = vsel %vm224_vm0, %v1137_v16, %v1138_v11  ;;  %v1144_v36 = vsel %vm1140_vm1, %v1135_v45, %v1138_v11  ;;  %1826 = vmatprep.subr.bf16.mxu0 %v2277_v2  ;;  %v2489_v16 = vld [vmem:[#allocation2 + $0x88] ss:$20 sps:$4 sm:$0xff]  }
 0x18b   : > { %v1063_v58 = vsel %vm307_vm3, %v2947_v22, %v1062_v62  ;;  %1070 = vst [vmem:[#allocation2 + $0x290] sm:$0xf] %v1064_v14  ;;  %v1143_v53 = vsel %vm1140_vm1, %v2929_v13, %v1142_v18  ;;  %1150 = vst [vmem:[#allocation2 + $0x2cc] sm:$0xf] %v1144_v36  ;;  %v1082_v63 = vpop.permute.xlu0 %1081  ;;  %1827 = vmatpush2.bf16.msra.mxu0 %v2276_v60  ;;  %2342 = vmatpush3.bf16.msra.mxu1 %v2487_v59  ;;  %v2490_v22 = vld [vmem:[#allocation2 + $0x1a0] ss:$20 sps:$4 sm:$0xff]  }
 0x18c   : > { %v1085_v24 = vrot.slane %v1082_v63, 4  ;;  %2343 = vmatprep.subr.bf16.mxu1 %v2488_v48  ;;  %v2323_v1 = vcombine.low %v1116_v23, %v1143_v53  ;;  %v2324_v54 = vcombine.high %v1116_v23, %v1143_v53 }
 0x18e   : > { %v1088_v56 = vsel %vm224_vm0, %v1084_v32, %v1085_v24  ;;  %v1090_v3 = vsel %vm334_vm4, %v1082_v63, %v1085_v24  ;;  %1829 = vmatmul.mubr.bf16.vlgmr.msra.gmra.mxu0 %v3447_v55  ;;  %1967 = vmatprep.subr.bf16.mxu0 %v2324_v54 }
 0x18f   : > { %v1089_v13 = vsel %vm334_vm4, %v2958_v30, %v1088_v56  ;;  %1096 = vst [vmem:[#allocation2 + $0x2a4] sm:$0xf] %v1090_v3  ;;  %1968 = vmatpush1.bf16.msra.mxu0 %v2323_v1  ;;  %2344 = vmatpush3.bf16.msra.mxu1 %v2489_v16  ;;  %v2498_v30 = vld [vmem:[#allocation2 + $0x150] ss:$20 sps:$4 sm:$0xff]  }
 0x190   : > { %2345 = vmatprep.subr.bf16.mxu1 %v2490_v22  ;;  %v2318_v12 = vcombine.low %v1063_v58, %v1089_v13  ;;  %v2319_v7 = vcombine.high %v1063_v58, %v1089_v13  ;;  %1838 = vmatprep.mubr.bf16.mxu0 %v3451_v21 }
 0x192   : > { %1969 = vmatprep.subr.bf16.mxu0 %v2319_v7  ;;  %v2495_v32 = vld [vmem:[#allocation2 + $0x2b8] ss:$20 sps:$4 sm:$0xff]   ;;  %v1883_v39 = vpop.f32.mrf.mxu1 }
 0x193   : > { %1970 = vmatpush1.bf16.msra.mxu0 %v2318_v12  ;;  %2346 = vmatpush3.bf16.msra.mxu1 %v2491_v37 }
 0x194   : > { %2347 = vmatprep.subr.bf16.mxu1 %v2494_v27  ;;  %2367 = vmatprep.subr.bf16.mxu0 %v2495_v32  ;;  %v1885_v61 = vpop.f32.mrf.mxu1 }
 0x196   : > { %1839 = vmatmul.mubr.bf16.gmra.mxu0 %v3469_v26  ;;  %v2500_v50 = vld [vmem:[#allocation2 + $0x290] ss:$20 sps:$4 sm:$0xff]  }
 0x197   : > { %2348 = vmatpush3.bf16.msra.mxu1 %v2497_v10  ;;  %1987 = vmatprep.mubr.bf16.mxu0 %v2636_v4 }
 0x198   : > { %2349 = vmatprep.subr.bf16.mxu1 %v2498_v30  ;;  %v3521_v9 = vpop.permute.xlu0 %1278 }
 0x19b   : > { %2350 = vmatpush3.bf16.msra.mxu1 %v2499_v52 }
 0x19e   : > { %2328 = vmatmul.mubr.msk.bf16.vlgmr.msra.gmra.mxu0 %vm1789_vm7, %v2502_v25  ;;  %2041 = vmatmul.mubr.bf16.vlgmr.msra.gmra.mxu1 %v3447_v55  ;;  %v1887_v55 = vpop.f32.mrf.mxu1 }
 0x19f   : > { %2368 = vmatpush3.bf16.msra.mxu0 %v2495_v32  ;;  %1997 = vmatprep.mubr.bf16.mxu0 %v2636_v4 }
 0x1a0   : > { %2369 = vmatprep.subr.bf16.mxu0 %v2500_v50  ;;  %2048 = vmatprep.mubr.bf16.mxu1 %v3451_v21  ;;  %v1889_v51 = vpop.f32.mrf.mxu1 }
 0x1a3   : > { %2370 = vmatpush3.bf16.msra.mxu0 %v2500_v50  ;;  %v1893_v8 = vpop.f32.mrf.mxu1 }
 0x1a5   : > { %v1895_v4 = vpop.f32.mrf.mxu1 }
 0x1a6   : > { %2329 = vmatmul.mubr.msk.bf16.gmra.mxu0 %vm1789_vm7, %v2503_v46  ;;  %2049 = vmatmul.mubr.bf16.gmra.mxu1 %v3469_v26  ;;  %v3515_v35 = vpop.permute.xlu1 %1273 }
 0x1a7   : > { %2371 = vmatprep.mubr.msk.bf16.mxu0 %vm1789_vm7, %v2502_v25  ;;  %v1897_v34 = vpop.f32.mrf.mxu1 }
 0x1a9   : > { %v1899_v43 = vpop.f32.mrf.mxu1 }
 0x1aa   : > { %v3519_v38 = vpop.permute.xlu1 %1283 }
 0x1ae   : > { %2372 = vmatmul.mubr.msk.bf16.vlgmr.msra.gmra.mxu0 %vm1789_vm7, %v2503_v46  ;;  %v3531_v17 = vpop.permute.xlu1 %1288 }
 0x23e   : > { %v1936_v21 = vpop.f32.mrf.mxu1 }
 0x23f   : > { %v1937_v53 = vadd.f32 %v1936_v21, %v3515_v35 }
 0x240   : > { %v1938_v41 = vpop.f32.mrf.mxu1 }
 0x241   : > { %v1939_v16 = vadd.f32 %v1938_v41, %v3515_v35 }
 0x242   : > { %v1940_v40 = vpop.f32.mrf.mxu1 }
 0x243   : > { %v1941_v13 = vadd.f32 %v1940_v40, %v3521_v9 }
 0x244   : > { %v1942_v49 = vpop.f32.mrf.mxu1 }
 0x245   : > { %v1943_v37 = vadd.f32 %v1942_v49, %v3521_v9 }
 0x246   : > { %v1946_v0 = vpop.f32.mrf.mxu1 }
 0x247   : > { %v1947_v52 = vadd.f32 %v1946_v0, %v3519_v38 }
 0x248   : > { %v1948_v15 = vpop.f32.mrf.mxu1 }
 0x249   : > { %v1949_v46 = vadd.f32 %v1948_v15, %v3519_v38 }
 0x24a   : > { %v1950_v2 = vpop.f32.mrf.mxu1 }
 0x24c   : > { %v1952_v18 = vpop.f32.mrf.mxu1 }
 0x24d   : > { %v1953_v21 = vadd.f32 %v1952_v18, %v3531_v17 }
 0x24e   : > { %v1830_v26 = vpop.f32.mrf.mxu0 }
 0x24f   : > { %v1831_v29 = vadd.f32 %v1830_v26, %v3515_v35 }
 0x250   : > { %v1832_v42 = vpop.f32.mrf.mxu0 }
 0x251   : > { %v1884_v47 = vadd.f32 %v1883_v39, %v1831_v29  ;;  %v1833_v28 = vadd.f32 %v1832_v42, %v3515_v35 }
 0x252   : > { %v1834_v6 = vpop.f32.mrf.mxu0 }
 0x253   : > { %2106 = vst [vmem:[%s3523_s8] sm:$0xff] %v1884_v47  ;;  %v1886_v57 = vadd.f32 %v1885_v61, %v1833_v28  ;;  %v1835_v5 = vadd.f32 %v1834_v6, %v3521_v9 }
 0x254   : > { %v1836_v31 = vpop.f32.mrf.mxu0 }
 0x255   : > { %2107 = vst [vmem:[%s3523_s8 + $0x8] sm:$0xff] %v1886_v57  ;;  %v1888_v20 = vadd.f32 %v1887_v55, %v1835_v5  ;;  %v1837_v23 = vadd.f32 %v1836_v31, %v3521_v9 }
 0x256   : > { %v1840_v19 = vpop.f32.mrf.mxu0 }
 0x257   : > { %2111 = vst [vmem:[%s3523_s8 + $0x28] sm:$0xff] %v1888_v20  ;;  %v1890_v44 = vadd.f32 %v1889_v51, %v1837_v23  ;;  %v1841_v45 = vadd.f32 %v1840_v19, %v3519_v38 }
 0x258   : > { %v1842_v11 = vpop.f32.mrf.mxu0 }
 0x259   : > { %2112 = vst [vmem:[%s3523_s8 + $0x30] sm:$0xff] %v1890_v44  ;;  %v1894_v60 = vadd.f32 %v1893_v8, %v1841_v45  ;;  %v1843_v33 = vadd.f32 %v1842_v11, %v3519_v38 }
 0x25a   : > { %v1844_v59 = vpop.f32.mrf.mxu0 }
 0x25b   : > { %2116 = vst [vmem:[%s3523_s8 + $0x50] sm:$0xff] %v1894_v60  ;;  %v1896_v62 = vadd.f32 %v1895_v4, %v1843_v33  ;;  %v1845_v14 = vadd.f32 %v1844_v59, %v3531_v17  ;;  %v1951_v4 = vadd.f32 %v1950_v2, %v3531_v17 }
 0x25c   : > { %v1846_v36 = vpop.f32.mrf.mxu0 }
 0x25d   : > { %2117 = vst [vmem:[%s3523_s8 + $0x58] sm:$0xff] %v1896_v62  ;;  %v1898_v48 = vadd.f32 %v1897_v34, %v1845_v14  ;;  %v1847_v58 = vadd.f32 %v1846_v36, %v3531_v17 }
 0x25e   : > { %v1989_v63 = vpop.f32.mrf.mxu0  ;;  %v2351_v24 = vpop.f32.mrf.mxu1 }
 0x25f   : > { %2121 = vst [vmem:[%s3523_s8 + $0x78] sm:$0xff] %v1898_v48  ;;  %v1900_v1 = vadd.f32 %v1899_v43, %v1847_v58  ;;  %v1990_v54 = vadd.f32 %v1989_v63, %v1937_v53 }
 0x260   : > { %v1991_v56 = vpop.f32.mrf.mxu0  ;;  %v2352_v3 = vpop.f32.mrf.mxu1 }
 0x261   : > { %2122 = vst [vmem:[%s3523_s8 + $0x80] sm:$0xff] %v1900_v1  ;;  %2108 = vst [vmem:[%s3523_s8 + $0x10] sm:$0xff] %v1990_v54  ;;  %v1992_v22 = vadd.f32 %v1991_v56, %v1939_v16  ;;  %v2353_v41 = vadd.f32 %v2352_v3, %v2351_v24 }
 0x262   : > { %v1993_v12 = vpop.f32.mrf.mxu0  ;;  %v2354_v7 = vpop.f32.mrf.mxu1 }
 0x263   : > { %2109 = vst [vmem:[%s3523_s8 + $0x18] sm:$0xff] %v1992_v22  ;;  %v1994_v27 = vadd.f32 %v1993_v12, %v1941_v13  ;;  %v2043_v57 = vadd.f32 %v2353_v41, %v3515_v35 }
 0x264   : > { %v1995_v32 = vpop.f32.mrf.mxu0  ;;  %v2355_v10 = vpop.f32.mrf.mxu1 }
 0x265   : > { %2113 = vst [vmem:[%s3523_s8 + $0x38] sm:$0xff] %v1994_v27  ;;  %v1996_v30 = vadd.f32 %v1995_v32, %v1943_v37  ;;  %v2356_v28 = vadd.f32 %v2355_v10, %v2354_v7 }
 0x266   : > { %v1999_v50 = vpop.f32.mrf.mxu0  ;;  %v2357_v25 = vpop.f32.mrf.mxu1 }
 0x267   : > { %2114 = vst [vmem:[%s3523_s8 + $0x40] sm:$0xff] %v1996_v30  ;;  %v2000_v39 = vadd.f32 %v1999_v50, %v1947_v52  ;;  %v2046_v23 = vadd.f32 %v2356_v28, %v3521_v9 }
 0x268   : > { %v2001_v61 = vpop.f32.mrf.mxu0  ;;  %v2358_v55 = vpop.f32.mrf.mxu1 }
 0x269   : > { %2118 = vst [vmem:[%s3523_s8 + $0x60] sm:$0xff] %v2000_v39  ;;  %v2002_v51 = vadd.f32 %v2001_v61, %v1949_v46  ;;  %v2359_v8 = vadd.f32 %v2358_v55, %v2357_v25 }
 0x26a   : > { %v2003_v34 = vpop.f32.mrf.mxu0  ;;  %v2360_v43 = vpop.f32.mrf.mxu1 }
 0x26b   : > { %2119 = vst [vmem:[%s3523_s8 + $0x68] sm:$0xff] %v2002_v51  ;;  %v2004_v40 = vadd.f32 %v2003_v34, %v1951_v4  ;;  %v2051_v0 = vadd.f32 %v2359_v8, %v3519_v38 }
 0x26c   : > { %v2005_v49 = vpop.f32.mrf.mxu0  ;;  %v2361_v26 = vpop.f32.mrf.mxu1 }
 0x26d   : > { %2123 = vst [vmem:[%s3523_s8 + $0x88] sm:$0xff] %v2004_v40  ;;  %v2006_v29 = vadd.f32 %v2005_v49, %v1953_v21  ;;  %v2362_v42 = vadd.f32 %v2361_v26, %v2360_v43 }
 0x26e   : > { %v2373_v47 = vpop.f32.mrf.mxu0 }
 0x26f   : > { %2124 = vst [vmem:[%s3523_s8 + $0x90] sm:$0xff] %v2006_v29  ;;  %v2100_v6 = vadd.f32 %v2373_v47, %v2051_v0  ;;  %v2054_v15 = vadd.f32 %v2362_v42, %v3531_v17 }
 0x270   : > { %v2091_v5 = vpop.f32.mrf.mxu0 }
 0x271   : > { %2120 = vst [vmem:[%s3523_s8 + $0x70] sm:$0xff] %v2100_v6  ;;  %v2092_v31 = vadd.f32 %v2091_v5, %v2043_v57 }
 0x272   : > { %v2374_v20 = vpop.f32.mrf.mxu0 }
 0x273   : > { %2110 = vst [vmem:[%s3523_s8 + $0x20] sm:$0xff] %v2092_v31  ;;  %v2103_v38 = vadd.f32 %v2374_v20, %v2054_v15 }
 0x274   : > { %v2094_v19 = vpop.f32.mrf.mxu0 }
 0x275   : > { %2125 = vst [vmem:[%s3523_s8 + $0x98] sm:$0xff] %v2103_v38  ;;  %v2095_v35 = vadd.f32 %v2094_v19, %v2046_v23 }
 0x277   : > { %2115 = vst [vmem:[%s3523_s8 + $0x48] sm:$0xff] %v2095_v35 }
 0x278   : > { %2571 = shalt.err (!%p2568_p0)
}
 0x279   : > { %s2572_s18 = scalar_lea.hbm %s3568_s26, 2560  ;;  %s2576_s27 = scalar_lea.hbm %s3618_s3, 5120 }
 0x27a   : > { %p2573_p11 = scmp.ne.s32.totalorder %s3568_s26, %s2572_s18  ;;  %p2577_p1 = scmp.lt.s32.totalorder %s3568_s26, %s3618_s3 }
 0x27b   : > { %p2578_p4 = scmp.lt.s32.totalorder %s2576_s27, %s2572_s18 }
 0x27c   : > { %p2574_p9 = pnand %p2573_p11, %p3634_p3 }
 0x27d   : > { %p2579_p6 = por %p2578_p4, %p2577_p1 }
 0x27e   : > { %p2575_p12 = pneg %p2574_p9 }
 0x280   : > { %p2580_p8 = pnand %p2579_p6, %p2575_p12 }
 0x282   : > { %2583 = shalt.err (!%p2580_p8)
}
 0x283   : > { %s2665_s4 = smov 640   ;;  %s2666_s8 = smov 40  }
 0x284   : > { %2386 = dma.vmem_to_hbm [thread:$0]  (%p3634_p3), %s3570_s9, 2560, %s3568_s26, %s2127_s16, %s2665_s4, %s2665_s4, %s2666_s8  }
 0x285 PF: > { %s2155_s7 = sand.u32 1, %s2614_s12   ;;  %p3635_p5 = scmp.ne.s32.totalorder %s3624_s19, 0 }
 0x286   : > { %p3636_p7 = scmp.ge.s32.totalorder %s2626_s15, 2  ;;  %s2156_s11 = scalar_lea.sflag [#allocation5], %s2155_s7 }
 0x288   : > { %p2397_p10 = pnand %p3636_p7, %p3635_p5 }
 0x28a   : > { %p2398_p2 = pneg %p2397_p10 }
 0x28c   : > { %2609 = dma.done.wait (%p2398_p2), %s2156_s11, 2560  }
 0x28d   : > { %2611 = vsyncadd (%p2398_p2), %s2156_s11, 4294964736  ;;  %p17_p13 = scmp.ge.s32.totalorder %s2741_s24, 4   ;;  %s3637_s12 = smov %s2618_s13 }
 0x28e   : > { %s3638_s13 = smov %s2622_s14  ;;  %s3639_s14 = smov %s2758_s5 }
 0x28f   : > { %s3640_s15 = smov %s2741_s24  ;;  %19 = sbr.rel (!%p17_p13) target bundleno = 6 (0x6), region = 81 }
 0x294   :  { %2161 = vsyncpa [#allocation4], 1 }
 0x295   :  { %2163 = vsyncpa [#allocation4 + $0x1], 1 }
 0x296   :  { %2164 = vsyncpa [#allocation7], 1 }
 0x297   :  { %2165 = vsyncpa [#allocation5], 1 }
 0x298   :  { %2167 = vsyncpa [#allocation5 + $0x1], 1 }

</bundles_post_ra>
